<compile_context>
chip_gen: v5e
topology: v5e:2x2
jax: 0.10.0
libtpu: 0.0.40
codegen_flags: <defaults>
</compile_context>

<pallas_src>
import jax
import jax.numpy as jnp
from jax.experimental import pallas as pl
from jax.experimental.pallas import tpu as pltpu


def _round_up(n, m):
    return ((n + m - 1) // m) * m


def _cdiv(a, b):
    return -(-a // b)


def _pick_k_tile(d_ff, target):
    """Largest multiple of 128 that divides d_ff and is <= target; else d_ff."""
    if d_ff % 128 != 0:
        return d_ff
    tk = (min(target, d_ff) // 128) * 128
    while tk >= 128:
        if d_ff % tk == 0:
            return tk
        tk -= 128
    return d_ff


def _ffn_kernel(x_ref, w1_ref, b1_ref, w2_ref, b2_ref, o_ref, acc_ref):
    """Accumulate one d_ff slice: acc += relu(x @ W1_k + b1_k) @ W2_k."""
    k = pl.program_id(1)

    @pl.when(k == 0)
    def _():
        acc_ref[...] = jnp.zeros_like(acc_ref)

    x = x_ref[...].astype(jnp.bfloat16)                        # (bm, d_model)
    h = jnp.dot(x, w1_ref[...], preferred_element_type=jnp.float32)  # (bm, tk)
    h = jnp.maximum(h + b1_ref[...], 0.0)                      # f32 ReLU slice
    acc_ref[...] += jnp.dot(h.astype(jnp.bfloat16), w2_ref[...],
                            preferred_element_type=jnp.float32)

    @pl.when(k == pl.num_programs(1) - 1)
    def _():
        o_ref[...] = (acc_ref[...] + b2_ref[...]).astype(o_ref.dtype)


def positionwise_feed_forward(x, w1, b1, w2, b2, *, block_m=None, block_k=512):
    """x: (..., d_model); w1: (d_model, d_ff); b1: (d_ff,); w2: (d_ff, d_model); b2: (d_model,)."""
    orig_shape = x.shape
    d_model = orig_shape[-1]
    d_ff = w1.shape[-1]

    rows = 1
    for s in orig_shape[:-1]:
        rows *= s
    x2 = x.reshape(rows, d_model)

    # Physical VMEM per TensorCore; fall back to the smallest (v7x: 64 MiB).
    try:
        vmem_cap = int(pltpu.get_tpu_info().vmem_capacity_bytes)
    except Exception:
        vmem_cap = 64 << 20

    if block_m is None:
        # Larger row tiles on 128-MiB parts (v5e/v6e); tighter on v7x (64 MiB).
        block_m = 512 if vmem_cap >= (96 << 20) else 256

    # Adaptive row tile: split rows as evenly as possible (multiple of 8) so the
    # ragged-tail padding stays small (e.g. rows=264 -> bm=264, not 512).
    n_row_blocks = max(1, _cdiv(rows, block_m))
    bm = _round_up(_cdiv(rows, n_row_blocks), 8)
    rows_p = _round_up(rows, bm)
    if rows_p != rows:
        x2 = jnp.pad(x2, ((0, rows_p - rows), (0, 0)))

    # d_ff streaming tile (lane-dense multiple of 128 that divides d_ff).
    tk = _pick_k_tile(d_ff, block_k)
    num_k = d_ff // tk

    # bf16 weights: native MXU input dtype, halves weight HBM/VMEM traffic.
    w1b = w1.astype(jnp.bfloat16)
    w2b = w2.astype(jnp.bfloat16)
    b1r = b1.reshape(1, d_ff).astype(jnp.float32)
    b2r = b2.reshape(1, d_model).astype(jnp.float32)

    # Explicit VMEM budget: double-buffered tiles, f32 accumulator, f32 + bf16
    # copies of the (bm, tk) ReLU intermediate, plus compiler headroom; capped
    # at 75% of physical VMEM (~48 MiB v7x, ~96 MiB v5e/v6e).
    act_in = 2 * bm * d_model * x2.dtype.itemsize            # x tile, 2 bufs
    act_out = 2 * bm * d_model * x.dtype.itemsize            # out tile, 2 bufs
    w_stream = 2 * (d_model * tk + tk * d_model) * 2         # bf16 W1/W2 blocks, 2 bufs
    bias = 2 * (tk + d_model) * 4                            # b1/b2 blocks, 2 bufs
    acc = bm * d_model * 4                                    # f32 accumulator scratch
    inter = bm * tk * (4 + 2)                                 # f32 h + bf16 copy
    vmem_limit = act_in + act_out + w_stream + bias + acc + inter + (8 << 20)
    vmem_limit = max(vmem_limit, 16 << 20)
    vmem_limit = min(vmem_limit, (vmem_cap * 3) // 4)

    grid = (rows_p // bm, num_k)

    out = pl.pallas_call(
        _ffn_kernel,
        out_shape=jax.ShapeDtypeStruct((rows_p, d_model), x.dtype),
        grid=grid,
        in_specs=[
            pl.BlockSpec((bm, d_model), lambda i, k: (i, 0)),   # x tile (held over k)
            pl.BlockSpec((d_model, tk), lambda i, k: (0, k)),   # W1 column block (streamed)
            pl.BlockSpec((1, tk), lambda i, k: (0, k)),         # b1 slice (streamed)
            pl.BlockSpec((tk, d_model), lambda i, k: (k, 0)),   # W2 row block (streamed)
            pl.BlockSpec((1, d_model), lambda i, k: (0, 0)),    # b2 (tiny, constant)
        ],
        out_specs=pl.BlockSpec((bm, d_model), lambda i, k: (i, 0)),
        scratch_shapes=[pltpu.VMEM((bm, d_model), jnp.float32)],
        compiler_params=pltpu.CompilerParams(
            dimension_semantics=("parallel", "arbitrary"),
            vmem_limit_bytes=vmem_limit),
    )(x2, w1b, b1r, w2b, b2r)

    if rows_p != rows:
        out = out[:rows]
    return out.reshape(orig_shape)


if __name__ == "__main__":
    # Module-implied feature dims (d_model=512, d_ff=2048), small batch/seq.
    d_model, d_ff = 512, 2048
    B, S = 2, 8

    key = jax.random.PRNGKey(0)
    k1, k2, k3, k4, kx = jax.random.split(key, 5)
    w1 = jax.random.normal(k1, (d_model, d_ff), jnp.float32) * 0.02
    b1 = jax.random.normal(k2, (d_ff,), jnp.float32) * 0.02
    w2 = jax.random.normal(k3, (d_ff, d_model), jnp.float32) * 0.02
    b2 = jax.random.normal(k4, (d_model,), jnp.float32) * 0.02
    x = jax.random.normal(kx, (B, S, d_model), jnp.float32)

    out = positionwise_feed_forward(x, w1, b1, w2, b2)
    out = jax.block_until_ready(out)

    # Pure-JAX f32 reference (dropout is identity at inference).
    ref = jnp.maximum(x @ w1 + b1, 0.0) @ w2 + b2

    assert out.shape == x.shape
    assert bool(jnp.all(jnp.isfinite(out)))
    # bf16 MXU operands + f32 accumulation: ~1e-2-level deviation from f32 ref.
    assert bool(jnp.allclose(out, ref, rtol=5e-2, atol=5e-2)), float(
        jnp.max(jnp.abs(out - ref)))
    print("KERNEL_OK")
</pallas_src>

<mosaic_0001>
module attributes {stable_mosaic.version = 11 : i64} {
  func.func @_ffn_kernel(%arg0: i32, %arg1: i32, %arg2: memref<16x512xf32, #tpu.memory_space<vmem>>, %arg3: memref<512x512xbf16, #tpu.memory_space<vmem>>, %arg4: memref<1x512xf32, #tpu.memory_space<vmem>>, %arg5: memref<512x512xbf16, #tpu.memory_space<vmem>>, %arg6: memref<1x512xf32, #tpu.memory_space<vmem>>, %arg7: memref<16x512xf32, #tpu.memory_space<vmem>>, %arg8: memref<16x512xf32, #tpu.memory_space<vmem>>) attributes {dimension_semantics = [#tpu.dimension_semantics<parallel>, #tpu.dimension_semantics<arbitrary>], iteration_bounds = array<i64: 1, 4>, scalar_prefetch = 0 : i64, scratch_operands = 1 : i64, tpu.core_type = #tpu.core_type<tc>, window_params = [{transform_indices = @transform_0, window_bounds = array<i64: 16, 512>}, {transform_indices = @transform_1, window_bounds = array<i64: 512, 512>}, {transform_indices = @transform_2, window_bounds = array<i64: 1, 512>}, {transform_indices = @transform_3, window_bounds = array<i64: 512, 512>}, {pipeline_mode = #tpu.pipeline_mode<synchronous>, transform_indices = @transform_4, window_bounds = array<i64: 1, 512>}, {transform_indices = @transform_5, window_bounds = array<i64: 16, 512>}]} {
    %c0_i32 = arith.constant 0 : i32
    %0 = arith.cmpi eq, %arg1, %c0_i32 : i32
    %1 = arith.extui %0 : i1 to i32
    %c0_i32_0 = arith.constant 0 : i32
    %2 = arith.cmpi ne, %1, %c0_i32_0 : i32
    scf.if %2 {
      %cst_15 = arith.constant 0.000000e+00 : f32
      %21 = vector.broadcast %cst_15 : f32 to vector<16x512xf32>
      %c0_16 = arith.constant 0 : index
      %c0_17 = arith.constant 0 : index
      %22 = vector.load %arg8[%c0_16, %c0_17] : memref<16x512xf32, #tpu.memory_space<vmem>>, vector<16x512xf32>
      tpu.vector_store %arg8[%c0_16, %c0_17], %21 {strides = array<i32>} : memref<16x512xf32, #tpu.memory_space<vmem>>, vector<16x512xf32>,
    } else {
    }
    %c0 = arith.constant 0 : index
    %c0_1 = arith.constant 0 : index
    %3 = vector.load %arg2[%c0, %c0_1] : memref<16x512xf32, #tpu.memory_space<vmem>>, vector<16x512xf32>
    %4 = arith.truncf %3 : vector<16x512xf32> to vector<16x512xbf16>
    %c0_2 = arith.constant 0 : index
    %c0_3 = arith.constant 0 : index
    %5 = vector.load %arg3[%c0_2, %c0_3] : memref<512x512xbf16, #tpu.memory_space<vmem>>, vector<512x512xbf16>
    %cst = arith.constant dense<0.000000e+00> : vector<16x512xf32>
    %6 = tpu.matmul %4, %5, %cst {dimension_numbers = #tpu.dot_dimension_numbers<[1], [0], [0], [1], [0, 0, 1, 1], [], []>} : vector<16x512xbf16>, vector<512x512xbf16>, vector<16x512xf32> -> vector<16x512xf32>
    %c0_4 = arith.constant 0 : index
    %c0_5 = arith.constant 0 : index
    %7 = vector.load %arg4[%c0_4, %c0_5] : memref<1x512xf32, #tpu.memory_space<vmem>>, vector<1x512xf32>
    %8 = vector.broadcast %7 : vector<1x512xf32> to vector<16x512xf32>
    %9 = arith.addf %6, %8 : vector<16x512xf32>
    %cst_6 = arith.constant 0.000000e+00 : f32
    %10 = vector.broadcast %cst_6 : f32 to vector<16x512xf32>
    %11 = arith.maximumf %9, %10 : vector<16x512xf32>
    %c0_7 = arith.constant 0 : index
    %c0_8 = arith.constant 0 : index
    %12 = vector.load %arg8[%c0_7, %c0_8] : memref<16x512xf32, #tpu.memory_space<vmem>>, vector<16x512xf32>
    %13 = arith.truncf %11 : vector<16x512xf32> to vector<16x512xbf16>
    %c0_9 = arith.constant 0 : index
    %c0_10 = arith.constant 0 : index
    %14 = vector.load %arg5[%c0_9, %c0_10] : memref<512x512xbf16, #tpu.memory_space<vmem>>, vector<512x512xbf16>
    %cst_11 = arith.constant dense<0.000000e+00> : vector<16x512xf32>
    %15 = tpu.matmul %13, %14, %cst_11 {dimension_numbers = #tpu.dot_dimension_numbers<[1], [0], [0], [1], [0, 0, 1, 1], [], []>} : vector<16x512xbf16>, vector<512x512xbf16>, vector<16x512xf32> -> vector<16x512xf32>
    %16 = arith.addf %12, %15 : vector<16x512xf32>
    %c0_12 = arith.constant 0 : index
    %c0_13 = arith.constant 0 : index
    %17 = vector.load %arg8[%c0_12, %c0_13] : memref<16x512xf32, #tpu.memory_space<vmem>>, vector<16x512xf32>
    tpu.vector_store %arg8[%c0_12, %c0_13], %16 {strides = array<i32>} : memref<16x512xf32, #tpu.memory_space<vmem>>, vector<16x512xf32>,
    %c3_i32 = arith.constant 3 : i32
    %18 = arith.cmpi eq, %arg1, %c3_i32 : i32
    %19 = arith.extui %18 : i1 to i32
    %c0_i32_14 = arith.constant 0 : i32
    %20 = arith.cmpi ne, %19, %c0_i32_14 : i32
    scf.if %20 {
      %c0_15 = arith.constant 0 : index
      %c0_16 = arith.constant 0 : index
      %21 = vector.load %arg8[%c0_15, %c0_16] : memref<16x512xf32, #tpu.memory_space<vmem>>, vector<16x512xf32>
      %c0_17 = arith.constant 0 : index
      %c0_18 = arith.constant 0 : index
      %22 = vector.load %arg6[%c0_17, %c0_18] : memref<1x512xf32, #tpu.memory_space<vmem>>, vector<1x512xf32>
      %23 = vector.broadcast %22 : vector<1x512xf32> to vector<16x512xf32>
      %24 = arith.addf %21, %23 : vector<16x512xf32>
      %c0_19 = arith.constant 0 : index
      %c0_20 = arith.constant 0 : index
      %25 = vector.load %arg7[%c0_19, %c0_20] : memref<16x512xf32, #tpu.memory_space<vmem>>, vector<16x512xf32>
      tpu.vector_store %arg7[%c0_19, %c0_20], %24 {strides = array<i32>} : memref<16x512xf32, #tpu.memory_space<vmem>>, vector<16x512xf32>,
    } else {
    }
    return
  }
  func.func @transform_0(%arg0: i32, %arg1: i32) -> (i32, i32) {
    %c0_i32 = arith.constant 0 : i32
    %c0_i32_0 = arith.constant 0 : i32
    return %arg0, %c0_i32 : i32, i32
  }
  func.func @transform_1(%arg0: i32, %arg1: i32) -> (i32, i32) {
    %c0_i32 = arith.constant 0 : i32
    %c0_i32_0 = arith.constant 0 : i32
    return %c0_i32, %arg1 : i32, i32
  }
  func.func @transform_2(%arg0: i32, %arg1: i32) -> (i32, i32) {
    %c0_i32 = arith.constant 0 : i32
    %c0_i32_0 = arith.constant 0 : i32
    return %c0_i32, %arg1 : i32, i32
  }
  func.func @transform_3(%arg0: i32, %arg1: i32) -> (i32, i32) {
    %c0_i32 = arith.constant 0 : i32
    %c0_i32_0 = arith.constant 0 : i32
    return %arg1, %c0_i32 : i32, i32
  }
  func.func @transform_4(%arg0: i32, %arg1: i32) -> (i32, i32) {
    %c0_i32 = arith.constant 0 : i32
    %c0_i32_0 = arith.constant 0 : i32
    %c0_i32_1 = arith.constant 0 : i32
    return %c0_i32, %c0_i32_0 : i32, i32
  }
  func.func @transform_5(%arg0: i32, %arg1: i32) -> (i32, i32) {
    %c0_i32 = arith.constant 0 : i32
    %c0_i32_0 = arith.constant 0 : i32
    return %arg0, %c0_i32 : i32, i32
  }
}

</mosaic_0001>

<bundles_post_ra>
// kernel: tpu_custom_call.1
= control target key start
LH: loop header
LB: loop body
LE: loop exit
PB: predicated region body
PF: predicated region fallthrough
CT: control target
= control target key end

     0   :  { %s5045_s0 = inlined_call_operand.hbm [shape: f32[16,512], index: 0, kind: input, shape index: {}]   ;;  %s5046_s1 = inlined_call_operand.hbm [shape: bf16[512,2048], index: 1, kind: input, shape index: {}]   ;;  %s5047_s2 = inlined_call_operand.hbm [shape: f32[1,2048], index: 2, kind: input, shape index: {}]   ;;  %s5048_s3 = inlined_call_operand.hbm [shape: bf16[2048,512], index: 3, kind: input, shape index: {}]   ;;  %s5049_s4 = inlined_call_operand.hbm [shape: f32[1,512], index: 4, kind: input, shape index: {}]   ;;  %s5050_s5 = inlined_call_operand.hbm [shape: f32[16,512], index: 5, kind: output, shape index: {}]  }
   0x1   :  { %5055 = sst [smem:[#allocation21_spill]] %s5046_s1 }
   0x2   :  { %5056 = sst [smem:[#allocation22_spill]] %s5049_s4 }
   0x3   :  { %10 = vsyncpa [#allocation4], 0 }
   0x4   :  { %11 = vsyncpa [#allocation7], 0 }
   0x5   :  { %13 = vsyncpa [#allocation7 + $0x1], 0 }
   0x6   :  { %14 = vsyncpa [#allocation10], 0 }
   0x7   :  { %16 = vsyncpa [#allocation10 + $0x1], 0 }
   0x8   :  { %17 = vsyncpa [#allocation5], 0  ;;  %s4305_s18 = smov 0   ;;  %s4307_s19 = smov 0  }
   0x9   :  { %s4309_s20 = smov 0   ;;  %s4311_s21 = smov 0  }
   0xa   :  { %s4313_s22 = smov 0   ;;  %s4315_s23 = smov 0  }
   0xb LB: > { %5057 = sst [smem:[#allocation18_spill]] %s4250_s20  ;;  %s4334_s24 = sadd.s32 4294967295, %s4262_s23   ;;  %s4262_s23 = sphi %s4315_s23, %s23_s23   ;;  %s4258_s22 = sphi %s4313_s22, %s5075_s22   ;;  %s4254_s21 = sphi %s4311_s21, %s5074_s21   ;;  %s4250_s20 = sphi %s4309_s20, %s5070_s20   ;;  %s4246_s19 = sphi %s4307_s19, %s5073_s19   ;;  %s4242_s18 = sphi %s4305_s18, %s5072_s18  }
   0xc   : > { %s68_s25 = sadd.s32 1, %s4250_s20  ;;  %p75_p0 = scmp.ne.s32.totalorder %s4250_s20, %s4246_s19 }
   0xd   : > { %p76_p1 = scmp.eq.s32.totalorder %s4262_s23, 0  ;;  %p81_p2 = scmp.ne.s32.totalorder %s4246_s19, %s4242_s18 }
   0xe   : > { %p82_p3 = scmp.eq.s32.totalorder %s4334_s24, 0  ;;  %p2609_p5 = scmp.ge.s32.totalorder %s4262_s23, 1 }
   0xf   : > { %p4342_p4 = por %p76_p1, %p75_p0  ;;  %p191_p7 = scmp.lt.s32.totalorder %s4262_s23, 5 }
  0x10   : > { %p4349_p6 = por %p82_p3, %p81_p2  ;;  %s5060_s4 = sld [smem:[#allocation22_spill]] }
  0x11   : > { %p4357_p8 = pnand %p2609_p5, %p191_p7  ;;  %s4264_s7 = smov [#allocation11]  }
  0x12   : > { %s223_s8 = sshll.u32 %s4264_s7, 4  ;;  %p3954_p10 = scmp.lt.s32.totalorder %s4262_s23, 4  ;;  %s224_s8 = int_to_ptr.vmem [resolvable:$true] %s223_s8 }
  0x13   : > { %p3935_p9 = pneg %p4357_p8  ;;  %s32_s11 = sadd.s32 1, %s4258_s22 }
  0x14   : > { %p4372_p12 = pnand %p3954_p10, %p4342_p4  ;;  %p33_p13 = scmp.ge.s32.totalorder %s32_s11, 4 }
  0x15   : > { %p4366_p11 = pnand %p3935_p9, %p82_p3  ;;  %s5052_s12 = sand.u32 1, %s4262_s23  }
  0x16   : > { %s221_s30 = sshll.u32 %s5060_s4, 4  ;;  %s236_s13 = sand.u32 1, %s4250_s20   ;;  %s222_s30 = int_to_ptr.hbm [resolvable:$true] %s221_s30 }
  0x17   : > { %3941 = dma.hbm_to_vmem [thread:$0]  (!%p4366_p11), %s222_s30, 64, %s224_s8, [#allocation10]  }
  0x18   : > { %s5077_s11 = smov (%p33_p13, %s32_s11), 0  ;;  %s4383_s14 = sshll.u32 %s236_s13, 10 }
  0x19   : > { %5064 = sst [smem:[#allocation19_spill]] %s5077_s11  ;;  %s65_s15 = ssub.s32 %s4258_s22, %s5077_s11 }
  0x1a   : > { %p66_p0 = scmp.eq.s32.totalorder %s65_s15, 0  ;;  %s3658_s16 = sshll.u32 %s4258_s22, 4 }
  0x1b   : > { %s5065_s1 = sld [smem:[#allocation21_spill]]  ;;  %s238_s28 = scalar_lea.vmem [#allocation6], %s4383_s14 }
  0x1c   : > { %s246_s29 = sshll.u32 %s238_s28, 4  ;;  %s235_s8 = scalar_lea.sflag [#allocation7], %s5052_s12  ;;  %s247_s29 = int_to_ptr.vmem [resolvable:$true] %s246_s29 }
  0x1d   : > { %s4395_s30 = scalar_select %p66_p0, %s4250_s20, %s68_s25  }
  0x1e   : > { %s4265_s4 = smov 1024   ;;  %s5054_s11 = smov 256  }
  0x1f   : > { %5066 = sst [smem:[#allocation20_spill]] %s4395_s30  ;;  %s4267_s15 = smov 16  }
  0x20   : > { %s206_s18 = sshll.u32 %s5045_s0, 4  ;;  %s4268_s25 = smov [#allocation3]   ;;  %s207_s18 = int_to_ptr.hbm [resolvable:$true] %s206_s18 }
  0x21   : > { %s243_s26 = scalar_lea.hbm %s5065_s1, %s3658_s16  ;;  %s2616_s28 = sshll.u32 %s236_s13, 2 }
  0x22   : > { %s244_s7 = sshll.u32 %s243_s26, 4  ;;  %s208_s26 = sshll.u32 %s4268_s25, 4  ;;  %s245_s7 = int_to_ptr.hbm [resolvable:$true] %s244_s7  ;;  %s209_s26 = int_to_ptr.vmem [resolvable:$true] %s208_s26 }
  0x23   : > { %3945 = dma.hbm_to_vmem [thread:$0]  (!%p4372_p12), %s245_s7, 16384, %s247_s29, %s235_s8, %s4265_s4, %s5054_s11, %s4267_s15  }
  0x24   : > { %s4269_s12 = smov 512   ;;  %s4270_s1 = smov 32  }
  0x25   : > { %3938 = dma.hbm_to_vmem [thread:$0]  (!%p4366_p11), %s207_s18, 1024, %s209_s26, [#allocation4], %s4269_s12, %s4269_s12, %s4270_s1  }
  0x26   : > { %s2617_s30 = sshll.u32 %s4258_s22, 2  ;;  %s260_s7 = scalar_lea.vmem [#allocation8], %s2616_s28 }
  0x27   : > { %s264_s29 = scalar_lea.hbm %s5047_s2, %s2617_s30  ;;  %s268_s16 = sshll.u32 %s260_s7, 4  ;;  %s269_s16 = int_to_ptr.vmem [resolvable:$true] %s268_s16 }
  0x28   : > { %s266_s17 = sshll.u32 %s264_s29, 4  ;;  %s3660_s25 = sshll.u32 %s4258_s22, 10  ;;  %s267_s17 = int_to_ptr.hbm [resolvable:$true] %s266_s17 }
  0x29   : > { %3948 = dma.hbm_to_vmem [thread:$0]  (!%p4372_p12), %s267_s17, 64, %s269_s16, %s235_s8  }
  0x2a   : > { %s285_s9 = scalar_lea.hbm %s5048_s3, %s3660_s25  ;;  %s279_s1 = scalar_lea.vmem [#allocation9], %s4383_s14 }
  0x2b   : > { %s288_s12 = sshll.u32 %s279_s1, 4  ;;  %s286_s18 = sshll.u32 %s285_s9, 4  ;;  %s289_s12 = int_to_ptr.vmem [resolvable:$true] %s288_s12  ;;  %s287_s18 = int_to_ptr.hbm [resolvable:$true] %s286_s18 }
  0x2c   : > { %s5067_s20 = sand.u32 1, %s4262_s23   ;;  %s5068_s30 = smov 256  }
  0x2d   : > { %s276_s26 = scalar_lea.sflag [#allocation10], %s5067_s20  ;;  %300 = sbr.rel (%p4357_p8) target bundleno = 584 (0x248), region = 40 }
  0x2e   : > { %3951 = dma.hbm_to_vmem [thread:$0]  (!%p4372_p12), %s287_s18, 16384, %s289_s12, %s276_s26, %s5068_s30, %s5068_s30, %s4267_s15  }
  0x32   : > { %4221 = dma.done.wait (%p82_p3), [#allocation4], 1024  }
  0x33   : > { %4223 = vsyncadd (%p82_p3), [#allocation4], 4294966272  ;;  %s307_s11 = sand.u32 1, %s4334_s24   ;;  %s309_s14 = sand.u32 1, %s4246_s19  }
  0x34   : > { %s2624_s8 = sshll.u32 %s309_s14, 10  ;;  %s308_s10 = scalar_lea.sflag [#allocation7], %s307_s11 }
  0x35   : > { %s4434_s28 = scalar_lea.vmem [#allocation6], %s2624_s8 }
  0x36   : > { %4225 = dma.done.wait (%p4349_p6), %s308_s10, 16448  }
  0x37   : > { %4227 = vsyncadd (%p4349_p6), %s308_s10, 4294950848  ;;  %s4440_s6 = sshll.u32 %s309_s14, 2  ;;  %s328_s4 = scalar_lea.sflag [#allocation10], %s307_s11 }
  0x38   : > { %s321_s15 = scalar_lea.vmem [#allocation8], %s4440_s6  ;;  %s4443_s29 = scalar_lea.vmem [#allocation9], %s2624_s8 }
  0x39   : > { %4229 = dma.done.wait (%p4349_p6), %s328_s4, 16384  }
  0x3a   : > { %4231 = vsyncadd (%p4349_p6), %s328_s4, 4294950912 }
  0x3b   : > { %4233 = dma.done.wait (%p82_p3), [#allocation10], 64  }
  0x3c   : > { %4235 = vsyncadd (%p82_p3), [#allocation10], 4294967232  ;;  %p2628_p1 = scmp.ne.s32.totalorder %s4254_s21, 0 }
  0x3e   : > { %377 = sbr.rel (%p2628_p1) target bundleno = 76 (0x4c), region = 64 }
  0x43   : > { %v4271_v0 = vmov 0.0  }
  0x44   : > { %378 = vst [vmem:[#allocation2 + $0x30] sm:$0xff] %v4271_v0 }
  0x45   : > { %379 = vst [vmem:[#allocation2] sm:$0xff] %v4271_v0 }
  0x46   : > { %380 = vst [vmem:[#allocation2 + $0x18] sm:$0xff] %v4271_v0 }
  0x47   : > { %381 = vst [vmem:[#allocation2 + $0x10] sm:$0xff] %v4271_v0 }
  0x48   : > { %382 = vst [vmem:[#allocation2 + $0x8] sm:$0xff] %v4271_v0 }
  0x49   : > { %383 = vst [vmem:[#allocation2 + $0x20] sm:$0xff] %v4271_v0 }
  0x4a   : > { %384 = vst [vmem:[#allocation2 + $0x28] sm:$0xff] %v4271_v0 }
  0x4b   : > { %385 = vst [vmem:[#allocation2 + $0x38] sm:$0xff] %v4271_v0 }
  0x4c PF: > { %v2743_v1 = vld [vmem:[%s4434_s28 + $0xe0] sm:$0xf]  ;;  %v3691_v2 = vld [vmem:[%s4434_s28 + $0xec] sm:$0xf0]  ;;  %p3653_p2 = scmp.ne.s32.totalorder %s4254_s21, 3 }
  0x4d   : > { %v2871_v3 = vld [vmem:[%s4434_s28 + $0x1e0] sm:$0xf]  ;;  %v2744_v4 = vor.u32 %v3691_v2, %v2743_v1  ;;  %v3723_v5 = vld [vmem:[%s4434_s28 + $0x1ec] sm:$0xf0] }
  0x4e   : > { %v2999_v6 = vld [vmem:[%s4434_s28 + $0x2e0] sm:$0xf]  ;;  %v3755_v7 = vld [vmem:[%s4434_s28 + $0x2ec] sm:$0xf0]  ;;  %v2872_v8 = vor.u32 %v3723_v5, %v2871_v3 }
  0x4f   : > { %v3000_v9 = vor.u32 %v3755_v7, %v2999_v6  ;;  %v3127_v10 = vld [vmem:[%s4434_s28 + $0x3e0] sm:$0xf]  ;;  %v3787_v11 = vld [vmem:[%s4434_s28 + $0x3ec] sm:$0xf0]  ;;  %1176 = vmatpush.bf16.msra.mxu0 %v2744_v4 }
  0x50   : > { %v2727_v12 = vld [vmem:[%s4434_s28 + $0xc0] sm:$0xf]  ;;  %v3128_v13 = vor.u32 %v3787_v11, %v3127_v10  ;;  %v3687_v14 = vld [vmem:[%s4434_s28 + $0xcc] sm:$0xf0]  ;;  %1190 = vmatpush.bf16.msra.mxu1 %v2872_v8 }
  0x51   : > { %v2855_v15 = vld [vmem:[%s4434_s28 + $0x1c0] sm:$0xf]  ;;  %v3719_v16 = vld [vmem:[%s4434_s28 + $0x1cc] sm:$0xf0]  ;;  %1204 = vmatpush.bf16.msra.mxu2 %v3000_v9  ;;  %v2728_v17 = vor.u32 %v3687_v14, %v2727_v12 }
  0x52   : > { %v2856_v18 = vor.u32 %v3719_v16, %v2855_v15  ;;  %v2983_v19 = vld [vmem:[%s4434_s28 + $0x2c0] sm:$0xf]  ;;  %v3751_v20 = vld [vmem:[%s4434_s28 + $0x2cc] sm:$0xf0]  ;;  %1218 = vmatpush.bf16.msra.mxu3 %v3128_v13 }
  0x53   : > { %v3111_v21 = vld [vmem:[%s4434_s28 + $0x3c0] sm:$0xf]  ;;  %v2984_v22 = vor.u32 %v3751_v20, %v2983_v19  ;;  %v3783_v23 = vld [vmem:[%s4434_s28 + $0x3cc] sm:$0xf0]  ;;  %1177 = vmatpush.bf16.msra.mxu0 %v2728_v17 }
  0x54   : > { %v2711_v24 = vld [vmem:[%s4434_s28 + $0xa0] sm:$0xf]  ;;  %v3683_v25 = vld [vmem:[%s4434_s28 + $0xac] sm:$0xf0]  ;;  %v3112_v26 = vor.u32 %v3783_v23, %v3111_v21  ;;  %1191 = vmatpush.bf16.msra.mxu1 %v2856_v18 }
  0x55   : > { %v2839_v27 = vld [vmem:[%s4434_s28 + $0x1a0] sm:$0xf]  ;;  %v3715_v28 = vld [vmem:[%s4434_s28 + $0x1ac] sm:$0xf0]  ;;  %v2712_v30 = vor.u32 %v3683_v25, %v2711_v24  ;;  %1205 = vmatpush.bf16.msra.mxu2 %v2984_v22 }
  0x56   : > { %v2967_v29 = vld [vmem:[%s4434_s28 + $0x2a0] sm:$0xf]  ;;  %v3747_v31 = vld [vmem:[%s4434_s28 + $0x2ac] sm:$0xf0]  ;;  %v2840_v34 = vor.u32 %v3715_v28, %v2839_v27  ;;  %1219 = vmatpush.bf16.msra.mxu3 %v3112_v26  ;;  %v3689_v28 = vld [vmem:[%s4434_s28 + $0xe4] sm:$0xf] }
  0x57   : > { %v3095_v32 = vld [vmem:[%s4434_s28 + $0x3a0] sm:$0xf]  ;;  %v3779_v33 = vld [vmem:[%s4434_s28 + $0x3ac] sm:$0xf0]  ;;  %v2968_v35 = vor.u32 %v3747_v31, %v2967_v29  ;;  %1178 = vmatpush.bf16.msra.mxu0 %v2712_v30  ;;  %v2745_v30 = vld [vmem:[%s4434_s28 + $0xf0] sm:$0xf0] }
  0x58   : > { %v2695_v36 = vld [vmem:[%s4434_s28 + $0x80] sm:$0xf]  ;;  %v3679_v37 = vld [vmem:[%s4434_s28 + $0x8c] sm:$0xf0]  ;;  %v3096_v39 = vor.u32 %v3779_v33, %v3095_v32  ;;  %1192 = vmatpush.bf16.msra.mxu1 %v2840_v34  ;;  %v3721_v31 = vld [vmem:[%s4434_s28 + $0x1e4] sm:$0xf] }
  0x59   : > { %v2823_v38 = vld [vmem:[%s4434_s28 + $0x180] sm:$0xf]  ;;  %v3711_v40 = vld [vmem:[%s4434_s28 + $0x18c] sm:$0xf0]  ;;  %v2696_v45 = vor.u32 %v3679_v37, %v2695_v36  ;;  %1206 = vmatpush.bf16.msra.mxu2 %v2968_v35  ;;  %v2873_v32 = vld [vmem:[%s4434_s28 + $0x1f0] sm:$0xf0] }
  0x5a   : > { %v2951_v41 = vld [vmem:[%s4434_s28 + $0x280] sm:$0xf]  ;;  %v3743_v42 = vld [vmem:[%s4434_s28 + $0x28c] sm:$0xf0]  ;;  %v2824_v46 = vor.u32 %v3711_v40, %v2823_v38  ;;  %1220 = vmatpush.bf16.msra.mxu3 %v3096_v39  ;;  %v3753_v33 = vld [vmem:[%s4434_s28 + $0x2e4] sm:$0xf] }
  0x5b   : > { %v3079_v43 = vld [vmem:[%s4434_s28 + $0x380] sm:$0xf]  ;;  %v3775_v44 = vld [vmem:[%s4434_s28 + $0x38c] sm:$0xf0]  ;;  %v2952_v47 = vor.u32 %v3743_v42, %v2951_v41  ;;  %1179 = vmatpush.bf16.msra.mxu0 %v2696_v45  ;;  %v3001_v34 = vld [vmem:[%s4434_s28 + $0x2f0] sm:$0xf0] }
  0x5c   : > { %v2679_v48 = vld [vmem:[%s4434_s28 + $0x60] sm:$0xf]  ;;  %v3675_v49 = vld [vmem:[%s4434_s28 + $0x6c] sm:$0xf0]  ;;  %v3080_v51 = vor.u32 %v3775_v44, %v3079_v43  ;;  %1193 = vmatpush.bf16.msra.mxu1 %v2824_v46  ;;  %v3785_v35 = vld [vmem:[%s4434_s28 + $0x3e4] sm:$0xf]  ;;  %v2748_v46 = vor.u32 %v3689_v28, %v2745_v30 }
  0x5d   : > { %v2807_v50 = vld [vmem:[%s4434_s28 + $0x160] sm:$0xf]  ;;  %v3707_v52 = vld [vmem:[%s4434_s28 + $0x16c] sm:$0xf0]  ;;  %v2680_v57 = vor.u32 %v3675_v49, %v2679_v48  ;;  %1207 = vmatpush.bf16.msra.mxu2 %v2952_v47  ;;  %v3129_v37 = vld [vmem:[%s4434_s28 + $0x3f0] sm:$0xf0] }
  0x5e   : > { %v2935_v53 = vld [vmem:[%s4434_s28 + $0x260] sm:$0xf]  ;;  %v3739_v54 = vld [vmem:[%s4434_s28 + $0x26c] sm:$0xf0]  ;;  %v2808_v58 = vor.u32 %v3707_v52, %v2807_v50  ;;  %1221 = vmatpush.bf16.msra.mxu3 %v3080_v51  ;;  %v389_v44 = vld [vmem:[#allocation3 + $0x18] sm:$0xff]  ;;  %v2876_v50 = vor.u32 %v3721_v31, %v2873_v32  ;;  %v3004_v51 = vor.u32 %v3753_v33, %v3001_v34 }
  0x5f   : > { %v3063_v55 = vld [vmem:[%s4434_s28 + $0x360] sm:$0xf]  ;;  %v3771_v56 = vld [vmem:[%s4434_s28 + $0x36c] sm:$0xf0]  ;;  %v2936_v59 = vor.u32 %v3739_v54, %v2935_v53  ;;  %1180 = vmatpush.bf16.msra.mxu0 %v2680_v57  ;;  %v393_v47 = vld [vmem:[#allocation3 + $0x38] sm:$0xff] }
  0x60   : > { %v2663_v60 = vld [vmem:[%s4434_s28 + $0x40] sm:$0xf]  ;;  %v3671_v61 = vld [vmem:[%s4434_s28 + $0x4c] sm:$0xf0]  ;;  %v3064_v63 = vor.u32 %v3771_v56, %v3063_v55  ;;  %1194 = vmatpush.bf16.msra.mxu1 %v2808_v58  ;;  %v3685_v48 = vld [vmem:[%s4434_s28 + $0xc4] sm:$0xf]  ;;  %v3132_v55 = vor.u32 %v3785_v35, %v3129_v37 }
  0x61   : > { %v2791_v62 = vld [vmem:[%s4434_s28 + $0x140] sm:$0xf]  ;;  %v3703_v0 = vld [vmem:[%s4434_s28 + $0x14c] sm:$0xf0]  ;;  %v2664_v5 = vor.u32 %v3671_v61, %v2663_v60  ;;  %1208 = vmatpush.bf16.msra.mxu2 %v2936_v59  ;;  %v2729_v49 = vld [vmem:[%s4434_s28 + $0xd0] sm:$0xf0]  ;;  %v4536_v61 = vpack.c.bf16 %v393_v47, %v389_v44 }
  0x62   : > { %v2919_v1 = vld [vmem:[%s4434_s28 + $0x240] sm:$0xf]  ;;  %v3735_v2 = vld [vmem:[%s4434_s28 + $0x24c] sm:$0xf0]  ;;  %v2792_v7 = vor.u32 %v3703_v0, %v2791_v62  ;;  %1222 = vmatpush.bf16.msra.mxu3 %v3064_v63  ;;  %v3717_v52 = vld [vmem:[%s4434_s28 + $0x1c4] sm:$0xf]  ;;  %v2732_v0 = vor.u32 %v3685_v48, %v2729_v49 }
  0x63   : > { %v3047_v3 = vld [vmem:[%s4434_s28 + $0x340] sm:$0xf]  ;;  %v3767_v4 = vld [vmem:[%s4434_s28 + $0x34c] sm:$0xf0]  ;;  %v2920_v8 = vor.u32 %v3735_v2, %v2919_v1  ;;  %1181 = vmatpush.bf16.msra.mxu0 %v2664_v5  ;;  %v387_v53 = vld [vmem:[#allocation3 + $0x8] sm:$0xff] }
  0x64   : > { %v2647_v6 = vld [vmem:[%s4434_s28 + $0x20] sm:$0xf]  ;;  %v3667_v9 = vld [vmem:[%s4434_s28 + $0x2c] sm:$0xf0]  ;;  %v3048_v12 = vor.u32 %v3767_v4, %v3047_v3  ;;  %1195 = vmatpush.bf16.msra.mxu1 %v2792_v7  ;;  %v391_v54 = vld [vmem:[#allocation3 + $0x28] sm:$0xff] }
  0x65   : > { %v2775_v10 = vld [vmem:[%s4434_s28 + $0x120] sm:$0xf]  ;;  %v3699_v11 = vld [vmem:[%s4434_s28 + $0x12c] sm:$0xf0]  ;;  %v2648_v19 = vor.u32 %v3667_v9, %v2647_v6  ;;  %1209 = vmatpush.bf16.msra.mxu2 %v2920_v8  ;;  %v2857_v57 = vld [vmem:[%s4434_s28 + $0x1d0] sm:$0xf0]  ;;  %v4540_v1 = vpack.c.bf16 %v391_v54, %v387_v53 }
  0x66   : > { %v2903_v13 = vld [vmem:[%s4434_s28 + $0x220] sm:$0xf]  ;;  %v3731_v14 = vld [vmem:[%s4434_s28 + $0x22c] sm:$0xf0]  ;;  %v2776_v24 = vor.u32 %v3699_v11, %v2775_v10  ;;  %1223 = vmatpush.bf16.msra.mxu3 %v3048_v12  ;;  %v3749_v58 = vld [vmem:[%s4434_s28 + $0x2c4] sm:$0xf]  ;;  %v2860_v2 = vor.u32 %v3717_v52, %v2857_v57 }
  0x67   : > { %v3031_v15 = vld [vmem:[%s4434_s28 + $0x320] sm:$0xf]  ;;  %v3763_v16 = vld [vmem:[%s4434_s28 + $0x32c] sm:$0xf0]  ;;  %v2904_v25 = vor.u32 %v3731_v14, %v2903_v13  ;;  %1182 = vmatpush.bf16.msra.mxu0 %v2648_v19  ;;  %v2985_v59 = vld [vmem:[%s4434_s28 + $0x2d0] sm:$0xf0] }
  0x68   : > { %v2631_v17 = vld [vmem:[%s4434_s28] sm:$0xf]  ;;  %v3663_v18 = vld [vmem:[%s4434_s28 + $0xc] sm:$0xf0]  ;;  %v3032_v29 = vor.u32 %v3763_v16, %v3031_v15  ;;  %1196 = vmatpush.bf16.msra.mxu1 %v2776_v24  ;;  %v3781_v62 = vld [vmem:[%s4434_s28 + $0x3c4] sm:$0xf]  ;;  %v2988_v3 = vor.u32 %v3749_v58, %v2985_v59 }
  0x69   : > { %v2759_v20 = vld [vmem:[%s4434_s28 + $0x100] sm:$0xf]  ;;  %v3695_v21 = vld [vmem:[%s4434_s28 + $0x10c] sm:$0xf0]  ;;  %v2632_v36 = vor.u32 %v3663_v18, %v2631_v17  ;;  %1210 = vmatpush.bf16.msra.mxu2 %v2904_v25  ;;  %v3113_v63 = vld [vmem:[%s4434_s28 + $0x3d0] sm:$0xf0] }
  0x6a   : > { %v2887_v22 = vld [vmem:[%s4434_s28 + $0x200] sm:$0xf]  ;;  %v3727_v23 = vld [vmem:[%s4434_s28 + $0x20c] sm:$0xf0]  ;;  %v2760_v40 = vor.u32 %v3695_v21, %v2759_v20  ;;  %1224 = vmatpush.bf16.msra.mxu3 %v3032_v29  ;;  %v3681_v4 = vld [vmem:[%s4434_s28 + $0xa4] sm:$0xf]  ;;  %v3116_v7 = vor.u32 %v3781_v62, %v3113_v63 }
  0x6b   : > { %v3015_v26 = vld [vmem:[%s4434_s28 + $0x300] sm:$0xf]  ;;  %v3759_v27 = vld [vmem:[%s4434_s28 + $0x30c] sm:$0xf0]  ;;  %v2888_v41 = vor.u32 %v3727_v23, %v2887_v22  ;;  %1183 = vmatpush.bf16.msra.mxu0 %v2632_v36  ;;  %v2713_v5 = vld [vmem:[%s4434_s28 + $0xb0] sm:$0xf0] }
  0x6c   : > { %v388_v38 = vld [vmem:[#allocation3 + $0x10] sm:$0xff]  ;;  %v386_v42 = vld [vmem:[#allocation3] sm:$0xff]  ;;  %v3016_v45 = vor.u32 %v3759_v27, %v3015_v26  ;;  %1197 = vmatpush.bf16.msra.mxu1 %v2760_v40  ;;  %v2716_v13 = vor.u32 %v3681_v4, %v2713_v5 }
  0x6d   : > { %v392_v39 = vld [vmem:[#allocation3 + $0x30] sm:$0xff]  ;;  %v390_v43 = vld [vmem:[#allocation3 + $0x20] sm:$0xff]  ;;  %1211 = vmatpush.bf16.msra.mxu2 %v2888_v41 }
  0x6e   : > { %v4529_v56 = vpack.c.bf16 %v392_v39, %v388_v38  ;;  %v4534_v60 = vpack.c.bf16 %v390_v43, %v386_v42  ;;  %1225 = vmatpush.bf16.msra.mxu3 %v3016_v45  ;;  %v3713_v6 = vld [vmem:[%s4434_s28 + $0x1a4] sm:$0xf]  ;;  %v2841_v8 = vld [vmem:[%s4434_s28 + $0x1b0] sm:$0xf0] }
  0x6f   : > { %1232 = vmatpush.bf16.msrb.mxu0 %v2748_v46  ;;  %v3745_v9 = vld [vmem:[%s4434_s28 + $0x2a4] sm:$0xf]  ;;  %v2969_v10 = vld [vmem:[%s4434_s28 + $0x2b0] sm:$0xf0]  ;;  %1198 = vmatmul.bf16.vlgmr.msra.gmra.mxu1 %v4540_v1  ;;  %v2844_v14 = vor.u32 %v3713_v6, %v2841_v8 }
  0x70   : > { %1246 = vmatpush.bf16.msrb.mxu1 %v2876_v50  ;;  %1212 = vmatmul.bf16.vlgmr.msra.gmra.mxu2 %v4529_v56  ;;  %v3777_v11 = vld [vmem:[%s4434_s28 + $0x3a4] sm:$0xf]  ;;  %v3097_v12 = vld [vmem:[%s4434_s28 + $0x3b0] sm:$0xf0]  ;;  %v2972_v15 = vor.u32 %v3745_v9, %v2969_v10 }
  0x71   : > { %1260 = vmatpush.bf16.msrb.mxu2 %v3004_v51  ;;  %1184 = vmatmul.bf16.vlgmr.msra.gmra.mxu0 %v4534_v60  ;;  %v3677_v16 = vld [vmem:[%s4434_s28 + $0x84] sm:$0xf]  ;;  %v2697_v17 = vld [vmem:[%s4434_s28 + $0x90] sm:$0xf0]  ;;  %v3100_v19 = vor.u32 %v3777_v11, %v3097_v12 }
  0x72   : > { %1274 = vmatpush.bf16.msrb.mxu3 %v3132_v55  ;;  %v3709_v18 = vld [vmem:[%s4434_s28 + $0x184] sm:$0xf]  ;;  %v2825_v20 = vld [vmem:[%s4434_s28 + $0x190] sm:$0xf0]  ;;  %v2700_v25 = vor.u32 %v3677_v16, %v2697_v17  ;;  %v3724_v17 = vld [vmem:[%s4434_s28 + $0x1f4] sm:$0xf0] }
  0x73   : > { %1226 = vmatmul.bf16.vlgmr.msra.gmra.mxu3 %v4536_v61  ;;  %1233 = vmatpush.bf16.msrb.mxu0 %v2732_v0  ;;  %v3741_v21 = vld [vmem:[%s4434_s28 + $0x284] sm:$0xf]  ;;  %v2953_v22 = vld [vmem:[%s4434_s28 + $0x290] sm:$0xf0]  ;;  %v2828_v26 = vor.u32 %v3709_v18, %v2825_v20  ;;  %v3007_v18 = vld [vmem:[%s4434_s28 + $0x2e8] sm:$0xf] }
  0x74   : > { %1247 = vmatpush.bf16.msrb.mxu1 %v2860_v2  ;;  %v3773_v23 = vld [vmem:[%s4434_s28 + $0x384] sm:$0xf]  ;;  %v3081_v24 = vld [vmem:[%s4434_s28 + $0x390] sm:$0xf0]  ;;  %v2956_v27 = vor.u32 %v3741_v21, %v2953_v22  ;;  %v3135_v22 = vld [vmem:[%s4434_s28 + $0x3e8] sm:$0xf] }
  0x75   : > { %1261 = vmatpush.bf16.msrb.mxu2 %v2988_v3  ;;  %v3673_v28 = vld [vmem:[%s4434_s28 + $0x64] sm:$0xf]  ;;  %v2681_v29 = vld [vmem:[%s4434_s28 + $0x70] sm:$0xf0]  ;;  %v3084_v31 = vor.u32 %v3773_v23, %v3081_v24  ;;  %v3788_v23 = vld [vmem:[%s4434_s28 + $0x3f4] sm:$0xf0] }
  0x76   : > { %1275 = vmatpush.bf16.msrb.mxu3 %v3116_v7  ;;  %v3705_v30 = vld [vmem:[%s4434_s28 + $0x164] sm:$0xf]  ;;  %v2809_v32 = vld [vmem:[%s4434_s28 + $0x170] sm:$0xf0]  ;;  %v2684_v37 = vor.u32 %v3673_v28, %v2681_v29  ;;  %v2735_v28 = vld [vmem:[%s4434_s28 + $0xc8] sm:$0xf] }
  0x77   : > { %1234 = vmatpush.bf16.msrb.mxu0 %v2716_v13  ;;  %v3737_v33 = vld [vmem:[%s4434_s28 + $0x264] sm:$0xf]  ;;  %v2937_v34 = vld [vmem:[%s4434_s28 + $0x270] sm:$0xf0]  ;;  %v2812_v38 = vor.u32 %v3705_v30, %v2809_v32  ;;  %v2751_v13 = vld [vmem:[%s4434_s28 + $0xe8] sm:$0xf] }
  0x78   : > { %1248 = vmatpush.bf16.msrb.mxu1 %v2844_v14  ;;  %v3769_v35 = vld [vmem:[%s4434_s28 + $0x364] sm:$0xf]  ;;  %v3065_v36 = vld [vmem:[%s4434_s28 + $0x370] sm:$0xf0]  ;;  %v2940_v39 = vor.u32 %v3737_v33, %v2937_v34  ;;  %v3692_v14 = vld [vmem:[%s4434_s28 + $0xf4] sm:$0xf0] }
  0x79   : > { %1262 = vmatpush.bf16.msrb.mxu2 %v2972_v15  ;;  %v3669_v40 = vld [vmem:[%s4434_s28 + $0x44] sm:$0xf]  ;;  %v2665_v41 = vld [vmem:[%s4434_s28 + $0x50] sm:$0xf0]  ;;  %v3068_v43 = vor.u32 %v3769_v35, %v3065_v36  ;;  %v2879_v15 = vld [vmem:[%s4434_s28 + $0x1e8] sm:$0xf] }
  0x7a   : > { %1276 = vmatpush.bf16.msrb.mxu3 %v3100_v19  ;;  %v3701_v42 = vld [vmem:[%s4434_s28 + $0x144] sm:$0xf]  ;;  %v2793_v44 = vld [vmem:[%s4434_s28 + $0x150] sm:$0xf0]  ;;  %v2668_v49 = vor.u32 %v3669_v40, %v2665_v41  ;;  %v3756_v19 = vld [vmem:[%s4434_s28 + $0x2f4] sm:$0xf0] }
  0x7b   : > { %1235 = vmatpush.bf16.msrb.mxu0 %v2700_v25  ;;  %v3733_v45 = vld [vmem:[%s4434_s28 + $0x244] sm:$0xf]  ;;  %v2921_v46 = vld [vmem:[%s4434_s28 + $0x250] sm:$0xf0]  ;;  %v2796_v50 = vor.u32 %v3701_v42, %v2793_v44  ;;  %v2752_v25 = vor.u32 %v3692_v14, %v2751_v13  ;;  %v3688_v29 = vld [vmem:[%s4434_s28 + $0xd4] sm:$0xf0] }
  0x7c   : > { %1249 = vmatpush.bf16.msrb.mxu1 %v2828_v26  ;;  %v3765_v47 = vld [vmem:[%s4434_s28 + $0x344] sm:$0xf]  ;;  %v3049_v48 = vld [vmem:[%s4434_s28 + $0x350] sm:$0xf0]  ;;  %v2924_v51 = vor.u32 %v3733_v45, %v2921_v46  ;;  %v2880_v26 = vor.u32 %v3724_v17, %v2879_v15  ;;  %v2863_v30 = vld [vmem:[%s4434_s28 + $0x1c8] sm:$0xf] }
  0x7d   : > { %1263 = vmatpush.bf16.msrb.mxu2 %v2956_v27  ;;  %v3665_v52 = vld [vmem:[%s4434_s28 + $0x24] sm:$0xf]  ;;  %v2649_v53 = vld [vmem:[%s4434_s28 + $0x30] sm:$0xf0]  ;;  %v3052_v55 = vor.u32 %v3765_v47, %v3049_v48  ;;  %v3008_v27 = vor.u32 %v3756_v19, %v3007_v18  ;;  %v3720_v32 = vld [vmem:[%s4434_s28 + $0x1d4] sm:$0xf0] }
  0x7e   : > { %1277 = vmatpush.bf16.msrb.mxu3 %v3084_v31  ;;  %v3697_v54 = vld [vmem:[%s4434_s28 + $0x124] sm:$0xf]  ;;  %v2777_v57 = vld [vmem:[%s4434_s28 + $0x130] sm:$0xf0]  ;;  %v2652_v0 = vor.u32 %v3665_v52, %v2649_v53  ;;  %v3136_v31 = vor.u32 %v3788_v23, %v3135_v22  ;;  %v2991_v33 = vld [vmem:[%s4434_s28 + $0x2c8] sm:$0xf] }
  0x7f   : > { %1236 = vmatpush.bf16.msrb.mxu0 %v2684_v37  ;;  %v3729_v58 = vld [vmem:[%s4434_s28 + $0x224] sm:$0xf]  ;;  %v2905_v59 = vld [vmem:[%s4434_s28 + $0x230] sm:$0xf0]  ;;  %v2780_v4 = vor.u32 %v3697_v54, %v2777_v57  ;;  %v3752_v34 = vld [vmem:[%s4434_s28 + $0x2d4] sm:$0xf0]  ;;  %v2736_v37 = vor.u32 %v3688_v29, %v2735_v28 }
  0x80   : > { %1250 = vmatpush.bf16.msrb.mxu1 %v2812_v38  ;;  %v3761_v62 = vld [vmem:[%s4434_s28 + $0x324] sm:$0xf]  ;;  %v3033_v63 = vld [vmem:[%s4434_s28 + $0x330] sm:$0xf0]  ;;  %v2908_v5 = vor.u32 %v3729_v58, %v2905_v59  ;;  %v3119_v35 = vld [vmem:[%s4434_s28 + $0x3c8] sm:$0xf]  ;;  %v2864_v38 = vor.u32 %v3720_v32, %v2863_v30 }
  0x81   : > { %1264 = vmatpush.bf16.msrb.mxu2 %v2940_v39  ;;  %v3661_v2 = vld [vmem:[%s4434_s28 + $0x4] sm:$0xf]  ;;  %v2633_v3 = vld [vmem:[%s4434_s28 + $0x10] sm:$0xf0]  ;;  %v3036_v9 = vor.u32 %v3761_v62, %v3033_v63  ;;  %v3784_v36 = vld [vmem:[%s4434_s28 + $0x3d4] sm:$0xf0]  ;;  %v2992_v39 = vor.u32 %v3752_v34, %v2991_v33 }
  0x82   : > { %1278 = vmatpush.bf16.msrb.mxu3 %v3068_v43  ;;  %v3693_v6 = vld [vmem:[%s4434_s28 + $0x104] sm:$0xf]  ;;  %v2761_v7 = vld [vmem:[%s4434_s28 + $0x110] sm:$0xf0]  ;;  %v2636_v16 = vor.u32 %v3661_v2, %v2633_v3  ;;  %v2719_v40 = vld [vmem:[%s4434_s28 + $0xa8] sm:$0xf]  ;;  %v3120_v43 = vor.u32 %v3784_v36, %v3119_v35 }
  0x83   : > { %1237 = vmatpush.bf16.msrb.mxu0 %v2668_v49  ;;  %v3725_v8 = vld [vmem:[%s4434_s28 + $0x204] sm:$0xf]  ;;  %v2889_v10 = vld [vmem:[%s4434_s28 + $0x210] sm:$0xf0]  ;;  %v2764_v20 = vor.u32 %v3693_v6, %v2761_v7  ;;  %v3684_v41 = vld [vmem:[%s4434_s28 + $0xb4] sm:$0xf0] }
  0x84   : > { %1251 = vmatpush.bf16.msrb.mxu1 %v2796_v50  ;;  %v3757_v11 = vld [vmem:[%s4434_s28 + $0x304] sm:$0xf]  ;;  %v3017_v12 = vld [vmem:[%s4434_s28 + $0x310] sm:$0xf0]  ;;  %v2892_v21 = vor.u32 %v3725_v8, %v2889_v10  ;;  %v2847_v42 = vld [vmem:[%s4434_s28 + $0x1a8] sm:$0xf]  ;;  %v2720_v49 = vor.u32 %v3684_v41, %v2719_v40 }
  0x85   : > { %1265 = vmatpush.bf16.msrb.mxu2 %v2924_v51  ;;  %v3020_v24 = vor.u32 %v3757_v11, %v3017_v12  ;;  %v3716_v44 = vld [vmem:[%s4434_s28 + $0x1b4] sm:$0xf0]  ;;  %v2975_v45 = vld [vmem:[%s4434_s28 + $0x2a8] sm:$0xf] }
  0x86   : > { %1279 = vmatpush.bf16.msrb.mxu3 %v3052_v55  ;;  %v3748_v46 = vld [vmem:[%s4434_s28 + $0x2b4] sm:$0xf0]  ;;  %v3103_v47 = vld [vmem:[%s4434_s28 + $0x3a8] sm:$0xf]  ;;  %v2848_v50 = vor.u32 %v3716_v44, %v2847_v42 }
  0x87   : > { %1238 = vmatpush.bf16.msrb.mxu0 %v2652_v0  ;;  %v3780_v48 = vld [vmem:[%s4434_s28 + $0x3b4] sm:$0xf0]  ;;  %v2976_v51 = vor.u32 %v3748_v46, %v2975_v45  ;;  %v2703_v52 = vld [vmem:[%s4434_s28 + $0x88] sm:$0xf] }
  0x88   : > { %1252 = vmatpush.bf16.msrb.mxu1 %v2780_v4  ;;  %v3680_v53 = vld [vmem:[%s4434_s28 + $0x94] sm:$0xf0]  ;;  %v2831_v54 = vld [vmem:[%s4434_s28 + $0x188] sm:$0xf]  ;;  %v3104_v55 = vor.u32 %v3780_v48, %v3103_v47 }
  0x89   : > { %1266 = vmatpush.bf16.msrb.mxu2 %v2908_v5  ;;  %v3712_v57 = vld [vmem:[%s4434_s28 + $0x194] sm:$0xf0]  ;;  %v2959_v58 = vld [vmem:[%s4434_s28 + $0x288] sm:$0xf]  ;;  %v2704_v0 = vor.u32 %v3680_v53, %v2703_v52  ;;  %v2881_v53 = vld [vmem:[%s4434_s28 + $0x1f8] sm:$0xf0] }
  0x8a   : > { %1280 = vmatpush.bf16.msrb.mxu3 %v3036_v9  ;;  %v3744_v59 = vld [vmem:[%s4434_s28 + $0x294] sm:$0xf0]  ;;  %v3087_v62 = vld [vmem:[%s4434_s28 + $0x388] sm:$0xf]  ;;  %v2832_v2 = vor.u32 %v3712_v57, %v2831_v54  ;;  %v3754_v54 = vld [vmem:[%s4434_s28 + $0x2ec] sm:$0xf] }
  0x8b   : > { %1239 = vmatpush.bf16.msrb.mxu0 %v2636_v16  ;;  %v3776_v63 = vld [vmem:[%s4434_s28 + $0x394] sm:$0xf0]  ;;  %v2960_v3 = vor.u32 %v3744_v59, %v2959_v58  ;;  %v2687_v4 = vld [vmem:[%s4434_s28 + $0x68] sm:$0xf]  ;;  %v3786_v59 = vld [vmem:[%s4434_s28 + $0x3ec] sm:$0xf] }
  0x8c   : > { %1253 = vmatpush.bf16.msrb.mxu1 %v2764_v20  ;;  %v3676_v5 = vld [vmem:[%s4434_s28 + $0x74] sm:$0xf0]  ;;  %v2815_v6 = vld [vmem:[%s4434_s28 + $0x168] sm:$0xf]  ;;  %v3088_v7 = vor.u32 %v3776_v63, %v3087_v62  ;;  %v3137_v62 = vld [vmem:[%s4434_s28 + $0x3f8] sm:$0xf0] }
  0x8d   : > { %1267 = vmatpush.bf16.msrb.mxu2 %v2892_v21  ;;  %v3708_v8 = vld [vmem:[%s4434_s28 + $0x174] sm:$0xf0]  ;;  %v2943_v9 = vld [vmem:[%s4434_s28 + $0x268] sm:$0xf]  ;;  %v2688_v13 = vor.u32 %v3676_v5, %v2687_v4  ;;  %v3686_v4 = vld [vmem:[%s4434_s28 + $0xcc] sm:$0xf] }
  0x8e   : > { %1281 = vmatpush.bf16.msrb.mxu3 %v3020_v24  ;;  %1240 = vmatmul.bf16.vlgmr.msrb.gmra.mxu0 %v4534_v60  ;;  %v3740_v10 = vld [vmem:[%s4434_s28 + $0x274] sm:$0xf0]  ;;  %v3071_v11 = vld [vmem:[%s4434_s28 + $0x368] sm:$0xf]  ;;  %v2816_v14 = vor.u32 %v3708_v8, %v2815_v6  ;;  %v2737_v5 = vld [vmem:[%s4434_s28 + $0xd8] sm:$0xf0] }
  0x8f   : > { %1288 = vmatpush.bf16.msra.mxu0 %v2752_v25  ;;  %1254 = vmatmul.bf16.vlgmr.msrb.gmra.mxu1 %v4540_v1  ;;  %v3772_v12 = vld [vmem:[%s4434_s28 + $0x374] sm:$0xf0]  ;;  %v2944_v15 = vor.u32 %v3740_v10, %v2943_v9  ;;  %v2671_v16 = vld [vmem:[%s4434_s28 + $0x48] sm:$0xf]  ;;  %v3718_v6 = vld [vmem:[%s4434_s28 + $0x1cc] sm:$0xf] }
  0x90   : > { %1302 = vmatpush.bf16.msra.mxu1 %v2880_v26  ;;  %1268 = vmatmul.bf16.vlgmr.msrb.gmra.mxu2 %v4529_v56  ;;  %v3672_v17 = vld [vmem:[%s4434_s28 + $0x54] sm:$0xf0]  ;;  %v2799_v18 = vld [vmem:[%s4434_s28 + $0x148] sm:$0xf]  ;;  %v3072_v19 = vor.u32 %v3772_v12, %v3071_v11  ;;  %v2865_v8 = vld [vmem:[%s4434_s28 + $0x1d8] sm:$0xf0] }
  0x91   : > { %1316 = vmatpush.bf16.msra.mxu2 %v3008_v27  ;;  %1282 = vmatmul.bf16.vlgmr.msrb.gmra.mxu3 %v4536_v61  ;;  %v3704_v20 = vld [vmem:[%s4434_s28 + $0x154] sm:$0xf0]  ;;  %v2927_v21 = vld [vmem:[%s4434_s28 + $0x248] sm:$0xf]  ;;  %v2672_v25 = vor.u32 %v3672_v17, %v2671_v16  ;;  %v3750_v9 = vld [vmem:[%s4434_s28 + $0x2cc] sm:$0xf] }
  0x92   : > { %1330 = vmatpush.bf16.msra.mxu3 %v3136_v31  ;;  %v3736_v22 = vld [vmem:[%s4434_s28 + $0x254] sm:$0xf0]  ;;  %v3055_v23 = vld [vmem:[%s4434_s28 + $0x348] sm:$0xf]  ;;  %v2800_v26 = vor.u32 %v3704_v20, %v2799_v18  ;;  %v2993_v10 = vld [vmem:[%s4434_s28 + $0x2d8] sm:$0xf0] }
  0x93   : > { %1289 = vmatpush.bf16.msra.mxu0 %v2736_v37  ;;  %v3768_v24 = vld [vmem:[%s4434_s28 + $0x354] sm:$0xf0]  ;;  %v2928_v27 = vor.u32 %v3736_v22, %v2927_v21  ;;  %v2655_v28 = vld [vmem:[%s4434_s28 + $0x28] sm:$0xf]  ;;  %v3782_v11 = vld [vmem:[%s4434_s28 + $0x3cc] sm:$0xf] }
  0x94   : > { %1303 = vmatpush.bf16.msra.mxu1 %v2864_v38  ;;  %v3668_v29 = vld [vmem:[%s4434_s28 + $0x34] sm:$0xf0]  ;;  %v2783_v30 = vld [vmem:[%s4434_s28 + $0x128] sm:$0xf]  ;;  %v3056_v31 = vor.u32 %v3768_v24, %v3055_v23  ;;  %v3121_v12 = vld [vmem:[%s4434_s28 + $0x3d8] sm:$0xf0] }
  0x95   : > { %1317 = vmatpush.bf16.msra.mxu2 %v2992_v39  ;;  %v3700_v32 = vld [vmem:[%s4434_s28 + $0x134] sm:$0xf0]  ;;  %v2911_v33 = vld [vmem:[%s4434_s28 + $0x228] sm:$0xf]  ;;  %v2656_v37 = vor.u32 %v3668_v29, %v2655_v28  ;;  %v3682_v16 = vld [vmem:[%s4434_s28 + $0xac] sm:$0xf] }
  0x96   : > { %1331 = vmatpush.bf16.msra.mxu3 %v3120_v43  ;;  %v3732_v34 = vld [vmem:[%s4434_s28 + $0x234] sm:$0xf0]  ;;  %v3039_v35 = vld [vmem:[%s4434_s28 + $0x328] sm:$0xf]  ;;  %v2784_v40 = vor.u32 %v3700_v32, %v2783_v30  ;;  %v2721_v17 = vld [vmem:[%s4434_s28 + $0xb8] sm:$0xf0] }
  0x97   : > { %1290 = vmatpush.bf16.msra.mxu0 %v2720_v49  ;;  %v3764_v36 = vld [vmem:[%s4434_s28 + $0x334] sm:$0xf0]  ;;  %v2639_v38 = vld [vmem:[%s4434_s28 + $0x8] sm:$0xf]  ;;  %v2912_v41 = vor.u32 %v3732_v34, %v2911_v33  ;;  %v3690_v49 = vld [vmem:[%s4434_s28 + $0xec] sm:$0xf] }
  0x98   : > { %1304 = vmatpush.bf16.msra.mxu1 %v2848_v50  ;;  %v3664_v39 = vld [vmem:[%s4434_s28 + $0x14] sm:$0xf0]  ;;  %v2767_v42 = vld [vmem:[%s4434_s28 + $0x108] sm:$0xf]  ;;  %v3040_v45 = vor.u32 %v3764_v36, %v3039_v35  ;;  %v2753_v50 = vld [vmem:[%s4434_s28 + $0xf8] sm:$0xf0] }
  0x99   : > { %1318 = vmatpush.bf16.msra.mxu2 %v2976_v51  ;;  %v3696_v43 = vld [vmem:[%s4434_s28 + $0x114] sm:$0xf0]  ;;  %v2895_v44 = vld [vmem:[%s4434_s28 + $0x208] sm:$0xf]  ;;  %v3722_v51 = vld [vmem:[%s4434_s28 + $0x1ec] sm:$0xf]  ;;  %v2640_v52 = vor.u32 %v3664_v39, %v2639_v38 }
  0x9a   : > { %1332 = vmatpush.bf16.msra.mxu3 %v3104_v55  ;;  %v3728_v46 = vld [vmem:[%s4434_s28 + $0x214] sm:$0xf0]  ;;  %v3023_v47 = vld [vmem:[%s4434_s28 + $0x308] sm:$0xf]  ;;  %v3009_v55 = vld [vmem:[%s4434_s28 + $0x2f8] sm:$0xf0]  ;;  %v2768_v57 = vor.u32 %v3696_v43, %v2767_v42 }
  0x9b   : > { %1291 = vmatpush.bf16.msra.mxu0 %v2704_v0  ;;  %v3760_v48 = vld [vmem:[%s4434_s28 + $0x314] sm:$0xf0]  ;;  %v2896_v58 = vor.u32 %v3728_v46, %v2895_v44  ;;  %v2756_v0 = vor.u32 %v3690_v49, %v2753_v50  ;;  %v3714_v18 = vld [vmem:[%s4434_s28 + $0x1ac] sm:$0xf]  ;;  %v2849_v20 = vld [vmem:[%s4434_s28 + $0x1b8] sm:$0xf0] }
  0x9c   : > { %1305 = vmatpush.bf16.msra.mxu1 %v2832_v2  ;;  %v3024_v63 = vor.u32 %v3760_v48, %v3023_v47  ;;  %v2884_v2 = vor.u32 %v3722_v51, %v2881_v53  ;;  %v3746_v21 = vld [vmem:[%s4434_s28 + $0x2ac] sm:$0xf]  ;;  %v2977_v22 = vld [vmem:[%s4434_s28 + $0x2b8] sm:$0xf0] }
  0x9d   : > { %1319 = vmatpush.bf16.msra.mxu2 %v2960_v3  ;;  %v3012_v3 = vor.u32 %v3754_v54, %v3009_v55  ;;  %v3778_v23 = vld [vmem:[%s4434_s28 + $0x3ac] sm:$0xf]  ;;  %v3105_v24 = vld [vmem:[%s4434_s28 + $0x3b8] sm:$0xf0] }
  0x9e   : > { %1333 = vmatpush.bf16.msra.mxu3 %v3088_v7  ;;  %v3140_v7 = vor.u32 %v3786_v59, %v3137_v62  ;;  %v3678_v28 = vld [vmem:[%s4434_s28 + $0x8c] sm:$0xf]  ;;  %v2705_v29 = vld [vmem:[%s4434_s28 + $0x98] sm:$0xf0] }
  0x9f   : > { %1292 = vmatpush.bf16.msra.mxu0 %v2688_v13  ;;  %v2740_v13 = vor.u32 %v3686_v4, %v2737_v5  ;;  %v3710_v30 = vld [vmem:[%s4434_s28 + $0x18c] sm:$0xf]  ;;  %v2833_v32 = vld [vmem:[%s4434_s28 + $0x198] sm:$0xf0] }
  0xa0   : > { %1306 = vmatpush.bf16.msra.mxu1 %v2816_v14  ;;  %v2868_v14 = vor.u32 %v3718_v6, %v2865_v8  ;;  %v3742_v33 = vld [vmem:[%s4434_s28 + $0x28c] sm:$0xf]  ;;  %v2961_v34 = vld [vmem:[%s4434_s28 + $0x298] sm:$0xf0]  ;;  %v2836_v38 = vor.u32 %v3710_v30, %v2833_v32  ;;  %v3383_v32 = vld [vmem:[%s4443_s29 + $0x1e0] sm:$0xf] }
  0xa1   : > { %1320 = vmatpush.bf16.msra.mxu2 %v2944_v15  ;;  %v2996_v15 = vor.u32 %v3750_v9, %v2993_v10  ;;  %v3774_v35 = vld [vmem:[%s4434_s28 + $0x38c] sm:$0xf]  ;;  %v3089_v36 = vld [vmem:[%s4434_s28 + $0x398] sm:$0xf0]  ;;  %v2964_v39 = vor.u32 %v3742_v33, %v2961_v34  ;;  %v3851_v33 = vld [vmem:[%s4443_s29 + $0x1ec] sm:$0xf0] }
  0xa2   : > { %1334 = vmatpush.bf16.msra.mxu3 %v3072_v19  ;;  %v3124_v19 = vor.u32 %v3782_v11, %v3121_v12  ;;  %v3706_v42 = vld [vmem:[%s4434_s28 + $0x16c] sm:$0xf]  ;;  %v3092_v43 = vor.u32 %v3774_v35, %v3089_v36  ;;  %v2817_v44 = vld [vmem:[%s4434_s28 + $0x178] sm:$0xf0]  ;;  %v3239_v34 = vld [vmem:[%s4443_s29 + $0xc0] sm:$0xf]  ;;  %v3384_v36 = vor.u32 %v3851_v33, %v3383_v32 }
  0xa3   : > { %1293 = vmatpush.bf16.msra.mxu0 %v2672_v25  ;;  %v2724_v25 = vor.u32 %v3682_v16, %v2721_v17  ;;  %v2945_v46 = vld [vmem:[%s4434_s28 + $0x278] sm:$0xf0]  ;;  %v3770_v47 = vld [vmem:[%s4434_s28 + $0x36c] sm:$0xf]  ;;  %v2820_v50 = vor.u32 %v3706_v42, %v2817_v44  ;;  %v3815_v35 = vld [vmem:[%s4443_s29 + $0xcc] sm:$0xf0] }
  0xa4   : > { %1307 = vmatpush.bf16.msra.mxu1 %v2800_v26  ;;  %v2852_v26 = vor.u32 %v3714_v18, %v2849_v20  ;;  %v3073_v48 = vld [vmem:[%s4434_s28 + $0x378] sm:$0xf0]  ;;  %v3702_v54 = vld [vmem:[%s4434_s28 + $0x14c] sm:$0xf]  ;;  %v3207_v44 = vld [vmem:[%s4443_s29 + $0x80] sm:$0xf] }
  0xa5   : > { %1321 = vmatpush.bf16.msra.mxu2 %v2928_v27  ;;  %v2980_v27 = vor.u32 %v3746_v21, %v2977_v22  ;;  %v2673_v53 = vld [vmem:[%s4434_s28 + $0x58] sm:$0xf0]  ;;  %v3076_v55 = vor.u32 %v3770_v47, %v3073_v48  ;;  %v3766_v62 = vld [vmem:[%s4434_s28 + $0x34c] sm:$0xf]  ;;  %v4782_v32 = vld [vmem:[%s321_s15] sm:$0xf] }
  0xa6   : > { %1335 = vmatpush.bf16.msra.mxu3 %v3056_v31  ;;  %v3108_v31 = vor.u32 %v3778_v23, %v3105_v24  ;;  %v2929_v59 = vld [vmem:[%s4434_s28 + $0x258] sm:$0xf0]  ;;  %v3666_v4 = vld [vmem:[%s4434_s28 + $0x2c] sm:$0xf] }
  0xa7   : > { %1294 = vmatpush.bf16.msra.mxu0 %v2656_v37  ;;  %v2708_v37 = vor.u32 %v3678_v28, %v2705_v29  ;;  %v2657_v5 = vld [vmem:[%s4434_s28 + $0x38] sm:$0xf0]  ;;  %v3698_v6 = vld [vmem:[%s4434_s28 + $0x12c] sm:$0xf] }
  0xa8   : > { %1308 = vmatpush.bf16.msra.mxu1 %v2784_v40  ;;  %v3674_v40 = vld [vmem:[%s4434_s28 + $0x6c] sm:$0xf]  ;;  %v2785_v8 = vld [vmem:[%s4434_s28 + $0x138] sm:$0xf0] }
  0xa9   : > { %1322 = vmatpush.bf16.msra.mxu2 %v2912_v41  ;;  %v2689_v41 = vld [vmem:[%s4434_s28 + $0x78] sm:$0xf0]  ;;  %v3730_v9 = vld [vmem:[%s4434_s28 + $0x22c] sm:$0xf] }
  0xaa   : > { %1336 = vmatpush.bf16.msra.mxu3 %v3040_v45  ;;  %v3738_v45 = vld [vmem:[%s4434_s28 + $0x26c] sm:$0xf]  ;;  %v2692_v49 = vor.u32 %v3674_v40, %v2689_v41  ;;  %v2913_v10 = vld [vmem:[%s4434_s28 + $0x238] sm:$0xf0]  ;;  %v3223_v40 = vld [vmem:[%s4443_s29 + $0xa0] sm:$0xf] }
  0xab   : > { %1295 = vmatpush.bf16.msra.mxu0 %v2640_v52  ;;  %v2948_v51 = vor.u32 %v3738_v45, %v2945_v46  ;;  %v3670_v52 = vld [vmem:[%s4434_s28 + $0x4c] sm:$0xf]  ;;  %v3041_v12 = vld [vmem:[%s4434_s28 + $0x338] sm:$0xf0]  ;;  %v2916_v16 = vor.u32 %v3730_v9, %v2913_v10  ;;  %v3811_v41 = vld [vmem:[%s4443_s29 + $0xac] sm:$0xf0] }
  0xac   : > { %1309 = vmatpush.bf16.msra.mxu1 %v2768_v57  ;;  %v2801_v57 = vld [vmem:[%s4434_s28 + $0x158] sm:$0xf0]  ;;  %v3762_v11 = vld [vmem:[%s4434_s28 + $0x32c] sm:$0xf]  ;;  %v3351_v45 = vld [vmem:[%s4443_s29 + $0x1a0] sm:$0xf] }
  0xad   : > { %1323 = vmatpush.bf16.msra.mxu2 %v2896_v58  ;;  %v3734_v58 = vld [vmem:[%s4434_s28 + $0x24c] sm:$0xf]  ;;  %v2641_v17 = vld [vmem:[%s4434_s28 + $0x18] sm:$0xf0]  ;;  %v3044_v20 = vor.u32 %v3762_v11, %v3041_v12  ;;  %v3843_v46 = vld [vmem:[%s4443_s29 + $0x1ac] sm:$0xf0] }
  0xae   : > { %1337 = vmatpush.bf16.msra.mxu3 %v3024_v63  ;;  %1296 = vmatmul.bf16.vlgmr.msra.gmra.mxu0 %v4534_v60  ;;  %v3057_v63 = vld [vmem:[%s4434_s28 + $0x358] sm:$0xf0]  ;;  %v3694_v18 = vld [vmem:[%s4434_s28 + $0x10c] sm:$0xf]  ;;  %v3287_v9 = vld [vmem:[%s4443_s29 + $0x120] sm:$0xf] }
  0xaf   : > { %1344 = vmatpush.bf16.msrb.mxu0 %v2756_v0  ;;  %1310 = vmatmul.bf16.vlgmr.msra.gmra.mxu1 %v4540_v1  ;;  %v2676_v0 = vor.u32 %v3670_v52, %v2673_v53  ;;  %v3726_v21 = vld [vmem:[%s4434_s28 + $0x20c] sm:$0xf]  ;;  %v2897_v22 = vld [vmem:[%s4434_s28 + $0x218] sm:$0xf0]  ;;  %v3799_v52 = vld [vmem:[%s4443_s29 + $0x4c] sm:$0xf0] }
  0xb0   : > { %1358 = vmatpush.bf16.msrb.mxu1 %v2884_v2  ;;  %1324 = vmatmul.bf16.vlgmr.msra.gmra.mxu2 %v4529_v56  ;;  %v2804_v2 = vor.u32 %v3702_v54, %v2801_v57  ;;  %v3758_v23 = vld [vmem:[%s4434_s28 + $0x30c] sm:$0xf]  ;;  %v3025_v24 = vld [vmem:[%s4434_s28 + $0x318] sm:$0xf0]  ;;  %v2900_v29 = vor.u32 %v3726_v21, %v2897_v22  ;;  %v3835_v57 = vld [vmem:[%s4443_s29 + $0x16c] sm:$0xf0] }
  0xb1   : > { %1372 = vmatpush.bf16.msrb.mxu2 %v3012_v3  ;;  %1338 = vmatmul.bf16.vlgmr.msra.gmra.mxu3 %v4536_v61  ;;  %v2932_v3 = vor.u32 %v3734_v58, %v2929_v59  ;;  %v3028_v30 = vor.u32 %v3758_v23, %v3025_v24  ;;  %v3159_v58 = vld [vmem:[%s4443_s29 + $0x20] sm:$0xf]  ;;  %v3795_v59 = vld [vmem:[%s4443_s29 + $0x2c] sm:$0xf0]  ;;  %v3813_v12 = vld [vmem:[%s4443_s29 + $0xc4] sm:$0xf] }
  0xb2   : > { %1386 = vmatpush.bf16.msrb.mxu3 %v3140_v7  ;;  %v3060_v7 = vor.u32 %v3766_v62, %v3057_v63  ;;  %v3160_v63 = vor.u32 %v3795_v59, %v3159_v58  ;;  %v3827_v10 = vld [vmem:[%s4443_s29 + $0x12c] sm:$0xf0]  ;;  %v3809_v22 = vld [vmem:[%s4443_s29 + $0xa4] sm:$0xf]  ;;  %v3225_v23 = vld [vmem:[%s4443_s29 + $0xb0] sm:$0xf0] }
  0xb3   : > { %1345 = vmatpush.bf16.msrb.mxu0 %v2740_v13  ;;  %v2660_v13 = vor.u32 %v3666_v4, %v2657_v5  ;;  %v3791_v4 = vld [vmem:[%s4443_s29 + $0xc] sm:$0xf0] }
  0xb4   : > { %1359 = vmatpush.bf16.msrb.mxu1 %v2868_v14  ;;  %v3662_v14 = vld [vmem:[%s4434_s28 + $0xc] sm:$0xf] }
  0xb5   : > { %1373 = vmatpush.bf16.msrb.mxu2 %v2996_v15  ;;  %v2788_v15 = vor.u32 %v3698_v6, %v2785_v8  ;;  %v3817_v6 = vld [vmem:[%s4443_s29 + $0xe4] sm:$0xf] }
  0xb6   : > { %1387 = vmatpush.bf16.msrb.mxu3 %v3124_v19  ;;  %v2769_v19 = vld [vmem:[%s4434_s28 + $0x118] sm:$0xf0] }
  0xb7   : > { %1346 = vmatpush.bf16.msrb.mxu0 %v2724_v25  ;;  %v3255_v25 = vld [vmem:[%s4443_s29 + $0xe0] sm:$0xf]  ;;  %v2772_v28 = vor.u32 %v3694_v18, %v2769_v19  ;;  %v3883_v19 = vld [vmem:[%s4443_s29 + $0x2ec] sm:$0xf0] }
  0xb8   : > { %1360 = vmatpush.bf16.msrb.mxu1 %v2852_v26  ;;  %v3819_v26 = vld [vmem:[%s4443_s29 + $0xec] sm:$0xf0]  ;;  %v3511_v18 = vld [vmem:[%s4443_s29 + $0x2e0] sm:$0xf] }
  0xb9   : > { %1374 = vmatpush.bf16.msrb.mxu2 %v2980_v27  ;;  %v2644_v27 = vor.u32 %v3662_v14, %v2641_v17  ;;  %v3241_v14 = vld [vmem:[%s4443_s29 + $0xd0] sm:$0xf0]  ;;  %v3512_v24 = vor.u32 %v3883_v19, %v3511_v18 }
  0xba   : > { %1388 = vmatpush.bf16.msrb.mxu3 %v3108_v31  ;;  %v3256_v31 = vor.u32 %v3819_v26, %v3255_v25  ;;  %v3244_v21 = vor.u32 %v3813_v12, %v3241_v14  ;;  %v3385_v25 = vld [vmem:[%s4443_s29 + $0x1f0] sm:$0xf0]  ;;  %v3863_v14 = vld [vmem:[%s4443_s29 + $0x24c] sm:$0xf0] }
  0xbb   : > { %1347 = vmatpush.bf16.msrb.mxu0 %v2708_v37  ;;  %v3367_v37 = vld [vmem:[%s4443_s29 + $0x1c0] sm:$0xf]  ;;  %v3145_v18 = vld [vmem:[%s4443_s29 + $0x10] sm:$0xf0] }
  0xbc   : > { %1361 = vmatpush.bf16.msrb.mxu1 %v2836_v38  ;;  %v3847_v38 = vld [vmem:[%s4443_s29 + $0x1cc] sm:$0xf0] }
  0xbd   : > { %1375 = vmatpush.bf16.msrb.mxu2 %v2964_v39  ;;  %v3240_v39 = vor.u32 %v3815_v35, %v3239_v34  ;;  %v3368_v42 = vor.u32 %v3847_v38, %v3367_v37  ;;  %v3228_v34 = vor.u32 %v3809_v22, %v3225_v23  ;;  %v3805_v35 = vld [vmem:[%s4443_s29 + $0x84] sm:$0xf]  ;;  %v528_v37 = vperm.slane %v4782_v32, 0 }
  0xbe   : > { %1389 = vmatpush.bf16.msrb.mxu3 %v3092_v43  ;;  %v3224_v43 = vor.u32 %v3811_v41, %v3223_v40  ;;  %v3875_v40 = vld [vmem:[%s4443_s29 + $0x2ac] sm:$0xf0]  ;;  %v3841_v41 = vld [vmem:[%s4443_s29 + $0x1a4] sm:$0xf] }
  0xbf   : > { %1348 = vmatpush.bf16.msrb.mxu0 %v2692_v49  ;;  %v3335_v49 = vld [vmem:[%s4443_s29 + $0x180] sm:$0xf] }
  0xc0   : > { %1362 = vmatpush.bf16.msrb.mxu1 %v2820_v50  ;;  %v3839_v50 = vld [vmem:[%s4443_s29 + $0x18c] sm:$0xf0] }
  0xc1   : > { %1376 = vmatpush.bf16.msrb.mxu2 %v2948_v51  ;;  %v3175_v51 = vld [vmem:[%s4443_s29 + $0x40] sm:$0xf]  ;;  %v3336_v53 = vor.u32 %v3839_v50, %v3335_v49  ;;  %v3837_v49 = vld [vmem:[%s4443_s29 + $0x184] sm:$0xf] }
  0xc2   : > { %1390 = vmatpush.bf16.msrb.mxu3 %v3076_v55  ;;  %v3176_v54 = vor.u32 %v3799_v52, %v3175_v51  ;;  %v3319_v55 = vld [vmem:[%s4443_s29 + $0x160] sm:$0xf]  ;;  %v3797_v51 = vld [vmem:[%s4443_s29 + $0x44] sm:$0xf]  ;;  %v3177_v52 = vld [vmem:[%s4443_s29 + $0x50] sm:$0xf0] }
  0xc3   : > { %1349 = vmatpush.bf16.msrb.mxu0 %v2676_v0  ;;  %v3320_v62 = vor.u32 %v3835_v57, %v3319_v55  ;;  %v3303_v0 = vld [vmem:[%s4443_s29 + $0x140] sm:$0xf]  ;;  %v3180_v59 = vor.u32 %v3797_v51, %v3177_v52  ;;  %v3911_v52 = vld [vmem:[%s4443_s29 + $0x3cc] sm:$0xf0] }
  0xc4   : > { %1363 = vmatpush.bf16.msrb.mxu1 %v2804_v2  ;;  %v3831_v2 = vld [vmem:[%s4443_s29 + $0x14c] sm:$0xf0]  ;;  %v3623_v51 = vld [vmem:[%s4443_s29 + $0x3c0] sm:$0xf] }
  0xc5   : > { %1377 = vmatpush.bf16.msrb.mxu2 %v2932_v3  ;;  %v3143_v3 = vld [vmem:[%s4443_s29] sm:$0xf]  ;;  %v3304_v5 = vor.u32 %v3831_v2, %v3303_v0  ;;  %v3833_v0 = vld [vmem:[%s4443_s29 + $0x164] sm:$0xf] }
  0xc6   : > { %1391 = vmatpush.bf16.msrb.mxu3 %v3060_v7  ;;  %v3257_v7 = vld [vmem:[%s4443_s29 + $0xf0] sm:$0xf0]  ;;  %v3144_v8 = vor.u32 %v3791_v4, %v3143_v3  ;;  %v3793_v4 = vld [vmem:[%s4443_s29 + $0x24] sm:$0xf] }
  0xc7   : > { %1350 = vmatpush.bf16.msrb.mxu0 %v2660_v13  ;;  %v3260_v11 = vor.u32 %v3817_v6, %v3257_v7  ;;  %v3288_v13 = vor.u32 %v3827_v10, %v3287_v9  ;;  %v3321_v7 = vld [vmem:[%s4443_s29 + $0x170] sm:$0xf0] }
  0xc8   : > { %1364 = vmatpush.bf16.msrb.mxu1 %v2788_v15  ;;  %v3271_v15 = vld [vmem:[%s4443_s29 + $0x100] sm:$0xf]  ;;  %v3324_v10 = vor.u32 %v3833_v0, %v3321_v7  ;;  %v3215_v0 = vld [vmem:[%s4443_s29 + $0x88] sm:$0xf]  ;;  %v3481_v7 = vld [vmem:[%s4443_s29 + $0x2b0] sm:$0xf0] }
  0xc9   : > { %1378 = vmatpush.bf16.msrb.mxu2 %v2916_v16  ;;  %v3823_v16 = vld [vmem:[%s4443_s29 + $0x10c] sm:$0xf0] }
  0xca   : > { %1392 = vmatpush.bf16.msrb.mxu3 %v3044_v20  ;;  %v3272_v17 = vor.u32 %v3823_v16, %v3271_v15  ;;  %v3849_v20 = vld [vmem:[%s4443_s29 + $0x1e4] sm:$0xf] }
  0xcb   : > { %1351 = vmatpush.bf16.msrb.mxu0 %v2644_v27  ;;  %v3388_v26 = vor.u32 %v3849_v20, %v3385_v25  ;;  %v3495_v27 = vld [vmem:[%s4443_s29 + $0x2c0] sm:$0xf]  ;;  %v3829_v15 = vld [vmem:[%s4443_s29 + $0x144] sm:$0xf]  ;;  %v3305_v20 = vld [vmem:[%s4443_s29 + $0x150] sm:$0xf0] }
  0xcc   : > { %1365 = vmatpush.bf16.msrb.mxu1 %v2772_v28  ;;  %v3879_v28 = vld [vmem:[%s4443_s29 + $0x2cc] sm:$0xf0]  ;;  %v3308_v22 = vor.u32 %v3829_v15, %v3305_v20  ;;  %v3263_v25 = vld [vmem:[%s4443_s29 + $0xe8] sm:$0xf]  ;;  %v3591_v15 = vld [vmem:[%s4443_s29 + $0x380] sm:$0xf] }
  0xcd   : > { %1379 = vmatpush.bf16.msrb.mxu2 %v2900_v29  ;;  %v3845_v29 = vld [vmem:[%s4443_s29 + $0x1c4] sm:$0xf] }
  0xce   : > { %1393 = vmatpush.bf16.msrb.mxu3 %v3028_v30  ;;  %1352 = vmatmul.bf16.vlgmr.msrb.gmra.mxu0 %v4534_v60  ;;  %v3807_v60 = vld [vmem:[%s4443_s29 + $0x8c] sm:$0xf0]  ;;  %v3496_v30 = vor.u32 %v3879_v28, %v3495_v27  ;;  %v3415_v27 = vld [vmem:[%s4443_s29 + $0x220] sm:$0xf] }
  0xcf   : > { %2188 = vmatpush.bf16.msra.mxu0 %v3256_v31  ;;  %1366 = vmatmul.bf16.vlgmr.msrb.gmra.mxu1 %v4540_v1  ;;  %v3208_v47 = vor.u32 %v3807_v60, %v3207_v44  ;;  %v3352_v1 = vor.u32 %v3843_v46, %v3351_v45  ;;  %v3369_v31 = vld [vmem:[%s4443_s29 + $0x1d0] sm:$0xf0]  ;;  %v3859_v28 = vld [vmem:[%s4443_s29 + $0x22c] sm:$0xf0] }
  0xd0   : > { %2202 = vmatpush.bf16.msra.mxu1 %v3384_v36  ;;  %1380 = vmatmul.bf16.vlgmr.msrb.gmra.mxu2 %v4529_v56  ;;  %v3191_v56 = vld [vmem:[%s4443_s29 + $0x60] sm:$0xf]  ;;  %v3372_v33 = vor.u32 %v3845_v29, %v3369_v31  ;;  %v3209_v36 = vld [vmem:[%s4443_s29 + $0x90] sm:$0xf0]  ;;  %v3825_v29 = vld [vmem:[%s4443_s29 + $0x124] sm:$0xf] }
  0xd1   : > { %1394 = vmatmul.bf16.vlgmr.msrb.gmra.mxu3 %v4536_v61  ;;  %v3803_v61 = vld [vmem:[%s4443_s29 + $0x6c] sm:$0xf0]  ;;  %2216 = vmatpush.bf16.msra.mxu2 %v3512_v24  ;;  %v3212_v38 = vor.u32 %v3805_v35, %v3209_v36  ;;  %v3193_v44 = vld [vmem:[%s4443_s29 + $0x70] sm:$0xf0] }
  0xd2   : > { %v3192_v48 = vor.u32 %v3803_v61, %v3191_v56  ;;  %v3353_v45 = vld [vmem:[%s4443_s29 + $0x1b0] sm:$0xf0]  ;;  %v3463_v61 = vld [vmem:[%s4443_s29 + $0x280] sm:$0xf] }
  0xd3   : > { %2189 = vmatpush.bf16.msra.mxu0 %v3240_v39  ;;  %v3479_v39 = vld [vmem:[%s4443_s29 + $0x2a0] sm:$0xf]  ;;  %v3289_v35 = vld [vmem:[%s4443_s29 + $0x130] sm:$0xf0] }
  0xd4   : > { %2203 = vmatpush.bf16.msra.mxu1 %v3368_v42  ;;  %v3480_v60 = vor.u32 %v3875_v40, %v3479_v39  ;;  %v3292_v36 = vor.u32 %v3825_v29, %v3289_v35  ;;  %v3855_v39 = vld [vmem:[%s4443_s29 + $0x20c] sm:$0xf0]  ;;  %v3865_v29 = vld [vmem:[%s4443_s29 + $0x264] sm:$0xf] }
  0xd5   : > { %2217 = vmatpush.bf16.msra.mxu2 %v3496_v30 }
  0xd7   : > { %2190 = vmatpush.bf16.msra.mxu0 %v3224_v43  ;;  %v3801_v43 = vld [vmem:[%s4443_s29 + $0x64] sm:$0xf] }
  0xd8   : > { %2204 = vmatpush.bf16.msra.mxu1 %v3352_v1  ;;  %v3356_v1 = vor.u32 %v3841_v41, %v3353_v45  ;;  %v3196_v56 = vor.u32 %v3801_v43, %v3193_v44  ;;  %v3247_v41 = vld [vmem:[%s4443_s29 + $0xc8] sm:$0xf]  ;;  %v3821_v43 = vld [vmem:[%s4443_s29 + $0x104] sm:$0xf]  ;;  %v3273_v44 = vld [vmem:[%s4443_s29 + $0x110] sm:$0xf0] }
  0xd9   : > { %2218 = vmatpush.bf16.msra.mxu2 %v3480_v60  ;;  %v3816_v45 = vld [vmem:[%s4443_s29 + $0xd4] sm:$0xf0] }
  0xdb   : > { %2191 = vmatpush.bf16.msra.mxu0 %v3208_v47 }
  0xdc   : > { %2205 = vmatpush.bf16.msra.mxu1 %v3336_v53 }
  0xdf   : > { %2192 = vmatpush.bf16.msra.mxu0 %v3192_v48  ;;  %v3871_v48 = vld [vmem:[%s4443_s29 + $0x28c] sm:$0xf0] }
  0xe0   : > { %2206 = vmatpush.bf16.msra.mxu1 %v3320_v62  ;;  %v3464_v53 = vor.u32 %v3871_v48, %v3463_v61  ;;  %v3447_v62 = vld [vmem:[%s4443_s29 + $0x260] sm:$0xf]  ;;  %v3881_v61 = vld [vmem:[%s4443_s29 + $0x2e4] sm:$0xf]  ;;  %v3513_v48 = vld [vmem:[%s4443_s29 + $0x2f0] sm:$0xf0] }
  0xe2   : > { %2219 = vmatpush.bf16.msra.mxu2 %v3464_v53  ;;  %v3877_v53 = vld [vmem:[%s4443_s29 + $0x2c4] sm:$0xf] }
  0xe3   : > { %2193 = vmatpush.bf16.msra.mxu0 %v3176_v54  ;;  %v3337_v54 = vld [vmem:[%s4443_s29 + $0x190] sm:$0xf0] }
  0xe4   : > { %2207 = vmatpush.bf16.msra.mxu1 %v3304_v5  ;;  %v3340_v57 = vor.u32 %v3837_v49, %v3337_v54  ;;  %v3161_v5 = vld [vmem:[%s4443_s29 + $0x30] sm:$0xf0]  ;;  %v3516_v49 = vor.u32 %v3881_v61, %v3513_v48  ;;  %v3231_v54 = vld [vmem:[%s4443_s29 + $0xa8] sm:$0xf] }
  0xe5   : > { %v3164_v12 = vor.u32 %v3793_v4, %v3161_v5  ;;  %v3907_v4 = vld [vmem:[%s4443_s29 + $0x3ac] sm:$0xf0]  ;;  %v3873_v5 = vld [vmem:[%s4443_s29 + $0x2a4] sm:$0xf]  ;;  %v3151_v48 = vld [vmem:[%s4443_s29 + $0x8] sm:$0xf] }
  0xe7   : > { %2194 = vmatpush.bf16.msra.mxu0 %v3160_v63  ;;  %v3867_v63 = vld [vmem:[%s4443_s29 + $0x26c] sm:$0xf0] }
  0xe8   : > { %2208 = vmatpush.bf16.msra.mxu1 %v3288_v13  ;;  %v3448_v6 = vor.u32 %v3867_v63, %v3447_v62  ;;  %v3431_v13 = vld [vmem:[%s4443_s29 + $0x240] sm:$0xf]  ;;  %v529_v62 = vperm.slane %v4782_v32, 1 }
  0xe9   : > { %v3432_v19 = vor.u32 %v3863_v14, %v3431_v13  ;;  %v3199_v13 = vld [vmem:[%s4443_s29 + $0x68] sm:$0xf]  ;;  %v3804_v14 = vld [vmem:[%s4443_s29 + $0x74] sm:$0xf0] }
  0xea   : > { %2220 = vmatpush.bf16.msra.mxu2 %v3448_v6 }
  0xeb   : > { %2195 = vmatpush.bf16.msra.mxu0 %v3144_v8 }
  0xec   : > { %2209 = vmatpush.bf16.msra.mxu1 %v3272_v17  ;;  %v1199_v47 = vpop.f32.mrf.mxu1  ;;  %v3789_v17 = vld [vmem:[%s4443_s29 + $0x4] sm:$0xf] }
  0xee   : > { %v1185_v42 = vpop.f32.mrf.mxu0  ;;  %2221 = vmatpush.bf16.msra.mxu2 %v3432_v19  ;;  %v3465_v19 = vld [vmem:[%s4443_s29 + $0x290] sm:$0xf0] }
  0xef   : > { %2244 = vmatpush.bf16.msrb.mxu0 %v3260_v11  ;;  %v1186_v46 = vadd.f32 %v1185_v42, %v528_v37 }
  0xf0   : > { %2258 = vmatpush.bf16.msrb.mxu1 %v3388_v26  ;;  %v3148_v26 = vor.u32 %v3789_v17, %v3145_v18  ;;  %v3869_v17 = vld [vmem:[%s4443_s29 + $0x284] sm:$0xf] }
  0xf1   : > { %v1200_v50 = vadd.f32 %v1199_v47, %v1186_v46  ;;  %v3276_v46 = vor.u32 %v3821_v43, %v3273_v44  ;;  %v3639_v47 = vld [vmem:[%s4443_s29 + $0x3e0] sm:$0xf] }
  0xf3   : > { %2245 = vmatpush.bf16.msrb.mxu0 %v3244_v21  ;;  %v1213_v55 = vpop.f32.mrf.mxu2 }
  0xf4   : > { %2259 = vmatpush.bf16.msrb.mxu1 %v3372_v33  ;;  %v1214_v2 = vadd.f32 %v1213_v55, %v1200_v50  ;;  %v1201_v9 = vpop.f32.mrf.mxu1  ;;  %v3820_v33 = vld [vmem:[%s4443_s29 + $0xf4] sm:$0xf0]  ;;  %v3248_v50 = vor.u32 %v3816_v45, %v3247_v41  ;;  %v3559_v41 = vld [vmem:[%s4443_s29 + $0x340] sm:$0xf]  ;;  %v3861_v45 = vld [vmem:[%s4443_s29 + $0x244] sm:$0xf] }
  0xf5   : > { %v3264_v40 = vor.u32 %v3820_v33, %v3263_v25  ;;  %v3812_v55 = vld [vmem:[%s4443_s29 + $0xb4] sm:$0xf0] }
  0xf6   : > { %v1227_v58 = vpop.f32.mrf.mxu3  ;;  %v1187_v3 = vpop.f32.mrf.mxu0  ;;  %v3232_v63 = vor.u32 %v3812_v55, %v3231_v54  ;;  %v3800_v25 = vld [vmem:[%s4443_s29 + $0x54] sm:$0xf0]  ;;  %v3857_v54 = vld [vmem:[%s4443_s29 + $0x224] sm:$0xf]  ;;  %v3818_v55 = vld [vmem:[%s4443_s29 + $0xec] sm:$0xf] }
  0xf7   : > { %2246 = vmatpush.bf16.msrb.mxu0 %v3228_v34  ;;  %v1188_v8 = vadd.f32 %v1187_v3, %v528_v37  ;;  %v1228_v16 = vadd.f32 %v1227_v58, %v1214_v2  ;;  %v3416_v34 = vor.u32 %v3859_v28, %v3415_v27  ;;  %v3497_v58 = vld [vmem:[%s4443_s29 + $0x2d0] sm:$0xf0]  ;;  %v3808_v2 = vld [vmem:[%s4443_s29 + $0x94] sm:$0xf0]  ;;  %v3607_v3 = vld [vmem:[%s4443_s29 + $0x3a0] sm:$0xf] }
  0xf8   : > { %2260 = vmatpush.bf16.msrb.mxu1 %v3356_v1  ;;  %v3915_v1 = vld [vmem:[%s4443_s29 + $0x3ec] sm:$0xf0]  ;;  %v3608_v6 = vor.u32 %v3907_v4, %v3607_v3  ;;  %v3575_v27 = vld [vmem:[%s4443_s29 + $0x360] sm:$0xf] }
  0xf9   : > { %v1202_v11 = vadd.f32 %v1201_v9, %v1188_v8  ;;  %v1400_v30 = vmax.f32 %v1228_v16, 0.0  ;;  %2222 = vmatpush.bf16.msra.mxu2 %v3416_v34  ;;  %v3484_v9 = vor.u32 %v3873_v5, %v3481_v7  ;;  %v3903_v16 = vld [vmem:[%s4443_s29 + $0x38c] sm:$0xf0]  ;;  %v3814_v5 = vld [vmem:[%s4443_s29 + $0xcc] sm:$0xf] }
  0xfa   : > { %v3592_v18 = vor.u32 %v3903_v16, %v3591_v15  ;;  %v3899_v28 = vld [vmem:[%s4443_s29 + $0x36c] sm:$0xf0]  ;;  %v3375_v16 = vld [vmem:[%s4443_s29 + $0x1c8] sm:$0xf] }
  0xfb   : > { %2247 = vmatpush.bf16.msrb.mxu0 %v3212_v38  ;;  %v1215_v21 = vpop.f32.mrf.mxu2  ;;  %v3399_v38 = vld [vmem:[%s4443_s29 + $0x200] sm:$0xf] }
  0xfc   : > { %2261 = vmatpush.bf16.msrb.mxu1 %v3340_v57  ;;  %v1216_v23 = vadd.f32 %v1215_v21, %v1202_v11  ;;  %v3400_v42 = vor.u32 %v3855_v39, %v3399_v38  ;;  %v3624_v57 = vor.u32 %v3911_v52, %v3623_v51  ;;  %v3468_v21 = vor.u32 %v3869_v17, %v3465_v19  ;;  %v3167_v39 = vld [vmem:[%s4443_s29 + $0x28] sm:$0xf]  ;;  %v3543_v52 = vld [vmem:[%s4443_s29 + $0x320] sm:$0xf]  ;;  %v3848_v17 = vld [vmem:[%s4443_s29 + $0x1d4] sm:$0xf0] }
  0xfd   : > { %v3913_v19 = vld [vmem:[%s4443_s29 + $0x3e4] sm:$0xf] }
  0xfe   : > { %v1229_v24 = vpop.f32.mrf.mxu3  ;;  %2223 = vmatpush.bf16.msra.mxu2 %v3400_v42  ;;  %v3895_v42 = vld [vmem:[%s4443_s29 + $0x34c] sm:$0xf0] }
  0xff   : > { %2248 = vmatpush.bf16.msrb.mxu0 %v3196_v56  ;;  %v1230_v31 = vadd.f32 %v1229_v24, %v1216_v23  ;;  %v3640_v56 = vor.u32 %v3915_v1, %v3639_v47  ;;  %v3200_v23 = vor.u32 %v3804_v14, %v3199_v13  ;;  %v3183_v24 = vld [vmem:[%s4443_s29 + $0x48] sm:$0xf]  ;;  %v3560_v44 = vor.u32 %v3895_v42, %v3559_v41  ;;  %v3853_v13 = vld [vmem:[%s4443_s29 + $0x204] sm:$0xf]  ;;  %v3401_v14 = vld [vmem:[%s4443_s29 + $0x210] sm:$0xf0] }
 0x100   : > { %2262 = vmatpush.bf16.msrb.mxu1 %v3324_v10  ;;  %v3184_v38 = vor.u32 %v3800_v25, %v3183_v24  ;;  %v3376_v24 = vor.u32 %v3848_v17, %v3375_v16  ;;  %v3233_v25 = vld [vmem:[%s4443_s29 + $0xb8] sm:$0xf0] }
 0x101   : > { %v1404_v37 = vmax.f32 %v1230_v31, 0.0  ;;  %2230 = vmatpush.bf16.msra.mxu3 %v3640_v56  ;;  %v3449_v31 = vld [vmem:[%s4443_s29 + $0x270] sm:$0xf0] }
 0x102   : > { %2272 = vmatpush.bf16.msrb.mxu2 %v3516_v49  ;;  %v3452_v35 = vor.u32 %v3865_v29, %v3449_v31  ;;  %v3792_v49 = vld [vmem:[%s4443_s29 + $0x14] sm:$0xf0]  ;;  %v530_v31 = vperm.slane %v4782_v32, 2 }
 0x103   : > { %2249 = vmatpush.bf16.msrb.mxu0 %v3180_v59  ;;  %v4822_v60 = vpack.c.bf16 %v1404_v37, %v1400_v30  ;;  %v3500_v59 = vor.u32 %v3877_v53, %v3497_v58  ;;  %v3576_v30 = vor.u32 %v3899_v28, %v3575_v27  ;;  %v3891_v53 = vld [vmem:[%s4443_s29 + $0x32c] sm:$0xf0]  ;;  %v3152_v4 = vor.u32 %v3792_v49, %v3151_v48  ;;  %v3625_v27 = vld [vmem:[%s4443_s29 + $0x3d0] sm:$0xf0]  ;;  %v3359_v28 = vld [vmem:[%s4443_s29 + $0x1a8] sm:$0xf] }
 0x104   : > { %2263 = vmatpush.bf16.msrb.mxu1 %v3308_v22  ;;  %v3544_v58 = vor.u32 %v3891_v53, %v3543_v52  ;;  %v3844_v29 = vld [vmem:[%s4443_s29 + $0x1b4] sm:$0xf0]  ;;  %v3327_v48 = vld [vmem:[%s4443_s29 + $0x168] sm:$0xf]  ;;  %v3798_v53 = vld [vmem:[%s4443_s29 + $0x4c] sm:$0xf] }
 0x105   : > { %2196 = vmatmul.bf16.vlgmr.msra.gmra.mxu0 %v4822_v60  ;;  %2231 = vmatpush.bf16.msra.mxu3 %v3624_v57  ;;  %v3265_v57 = vld [vmem:[%s4443_s29 + $0xf8] sm:$0xf0]  ;;  %v3836_v49 = vld [vmem:[%s4443_s29 + $0x174] sm:$0xf0] }
 0x106   : > { %2273 = vmatpush.bf16.msrb.mxu2 %v3500_v59  ;;  %v3417_v59 = vld [vmem:[%s4443_s29 + $0x230] sm:$0xf0]  ;;  %v3268_v7 = vor.u32 %v3818_v55, %v3265_v57  ;;  %v3328_v55 = vor.u32 %v3836_v49, %v3327_v48  ;;  %v3185_v57 = vld [vmem:[%s4443_s29 + $0x58] sm:$0xf0] }
 0x107   : > { %2250 = vmatpush.bf16.msrb.mxu0 %v3164_v12  ;;  %v3216_v12 = vor.u32 %v3808_v2, %v3215_v0  ;;  %v3391_v0 = vld [vmem:[%s4443_s29 + $0x1e8] sm:$0xf]  ;;  %v3852_v2 = vld [vmem:[%s4443_s29 + $0x1f4] sm:$0xf0]  ;;  %v3420_v3 = vor.u32 %v3857_v54, %v3417_v59  ;;  %v3577_v59 = vld [vmem:[%s4443_s29 + $0x370] sm:$0xf0] }
 0x108   : > { %2264 = vmatpush.bf16.msrb.mxu1 %v3292_v36 }
 0x109   : > { %2232 = vmatpush.bf16.msra.mxu3 %v3608_v6 }
 0x10a   : > { %2274 = vmatpush.bf16.msrb.mxu2 %v3484_v9  ;;  %v3887_v9 = vld [vmem:[%s4443_s29 + $0x30c] sm:$0xf0] }
 0x10b   : > { %2251 = vmatpush.bf16.msrb.mxu0 %v3148_v26  ;;  %v1241_v8 = vpop.f32.mrf.mxu0 }
 0x10c   : > { %2265 = vmatpush.bf16.msrb.mxu1 %v3276_v46  ;;  %v1242_v10 = vadd.f32 %v1241_v8, %v529_v62  ;;  %v1255_v11 = vpop.f32.mrf.mxu1  ;;  %v3433_v46 = vld [vmem:[%s4443_s29 + $0x250] sm:$0xf0]  ;;  %v3527_v8 = vld [vmem:[%s4443_s29 + $0x300] sm:$0xf] }
 0x10d   : > { %2233 = vmatpush.bf16.msra.mxu3 %v3592_v18  ;;  %v3436_v1 = vor.u32 %v3861_v45, %v3433_v46  ;;  %v3404_v18 = vor.u32 %v3853_v13, %v3401_v14  ;;  %v3295_v13 = vld [vmem:[%s4443_s29 + $0x128] sm:$0xf]  ;;  %v3828_v14 = vld [vmem:[%s4443_s29 + $0x134] sm:$0xf0] }
 0x10e   : > { %v1256_v20 = vadd.f32 %v1255_v11, %v1242_v10  ;;  %2275 = vmatpush.bf16.msrb.mxu2 %v3468_v21  ;;  %v3392_v10 = vor.u32 %v3852_v2, %v3391_v0  ;;  %v3249_v11 = vld [vmem:[%s4443_s29 + $0xd8] sm:$0xf0]  ;;  %v3832_v0 = vld [vmem:[%s4443_s29 + $0x154] sm:$0xf0] }
 0x10f   : > { %2300 = vmatpush.bf16.msra.mxu0 %v3264_v40  ;;  %v3796_v40 = vld [vmem:[%s4443_s29 + $0x34] sm:$0xf0]  ;;  %v3252_v21 = vor.u32 %v3814_v5, %v3249_v11  ;;  %v3188_v5 = vor.u32 %v3798_v53, %v3185_v57  ;;  %v3893_v11 = vld [vmem:[%s4443_s29 + $0x344] sm:$0xf]  ;;  %v3838_v57 = vld [vmem:[%s4443_s29 + $0x18c] sm:$0xf] }
 0x110   : > { %v3168_v61 = vor.u32 %v3796_v40, %v3167_v39  ;;  %v3343_v39 = vld [vmem:[%s4443_s29 + $0x188] sm:$0xf]  ;;  %v3840_v40 = vld [vmem:[%s4443_s29 + $0x194] sm:$0xf0] }
 0x111   : > { %2234 = vmatpush.bf16.msra.mxu3 %v3576_v30  ;;  %v3876_v53 = vld [vmem:[%s4443_s29 + $0x2b4] sm:$0xf0] }
 0x112   : > { %2276 = vmatpush.bf16.msrb.mxu2 %v3452_v35  ;;  %v3360_v35 = vor.u32 %v3844_v29, %v3359_v28  ;;  %v3279_v28 = vld [vmem:[%s4443_s29 + $0x108] sm:$0xf]  ;;  %v3824_v29 = vld [vmem:[%s4443_s29 + $0x114] sm:$0xf0] }
 0x113   : > { %2301 = vmatpush.bf16.msra.mxu0 %v3248_v50  ;;  %v1269_v22 = vpop.f32.mrf.mxu2  ;;  %v1243_v34 = vpop.f32.mrf.mxu0 }
 0x114   : > { %v1283_v26 = vpop.f32.mrf.mxu3  ;;  %v1270_v33 = vadd.f32 %v1269_v22, %v1256_v20  ;;  %v1244_v36 = vadd.f32 %v1243_v34, %v529_v62  ;;  %v1257_v37 = vpop.f32.mrf.mxu1  ;;  %v3641_v20 = vld [vmem:[%s4443_s29 + $0x3f0] sm:$0xf0]  ;;  %v3810_v22 = vld [vmem:[%s4443_s29 + $0xac] sm:$0xf] }
 0x115   : > { %2252 = vmatmul.bf16.vlgmr.msrb.gmra.mxu0 %v4822_v60  ;;  %2235 = vmatpush.bf16.msra.mxu3 %v3560_v44  ;;  %v3806_v34 = vld [vmem:[%s4443_s29 + $0x8c] sm:$0xf] }
 0x116   : > { %v1258_v43 = vadd.f32 %v1257_v37, %v1244_v36  ;;  %v1284_v47 = vadd.f32 %v1283_v26, %v1270_v33  ;;  %2277 = vmatpush.bf16.msrb.mxu2 %v3436_v1  ;;  %v3909_v26 = vld [vmem:[%s4443_s29 + $0x3c4] sm:$0xf]  ;;  %v3236_v33 = vor.u32 %v3810_v22, %v3233_v25  ;;  %v3217_v36 = vld [vmem:[%s4443_s29 + $0x98] sm:$0xf0]  ;;  %v3802_v44 = vld [vmem:[%s4443_s29 + $0x6c] sm:$0xf]  ;;  %v3296_v22 = vor.u32 %v3828_v14, %v3295_v13 }
 0x117   : > { %2302 = vmatpush.bf16.msra.mxu0 %v3232_v63  ;;  %v3628_v30 = vor.u32 %v3909_v26, %v3625_v27  ;;  %v3905_v37 = vld [vmem:[%s4443_s29 + $0x3a4] sm:$0xf]  ;;  %v3201_v1 = vld [vmem:[%s4443_s29 + $0x78] sm:$0xf0]  ;;  %v3545_v25 = vld [vmem:[%s4443_s29 + $0x330] sm:$0xf0] }
 0x118   : > { %v1401_v62 = vmax.f32 %v1284_v47, 0.0  ;;  %v3344_v47 = vor.u32 %v3840_v40, %v3343_v39  ;;  %v3204_v52 = vor.u32 %v3802_v44, %v3201_v1  ;;  %v3280_v39 = vor.u32 %v3824_v29, %v3279_v28  ;;  %v3885_v40 = vld [vmem:[%s4443_s29 + $0x304] sm:$0xf]  ;;  %v3503_v1 = vld [vmem:[%s4443_s29 + $0x2c8] sm:$0xf] }
 0x119   : > { %2236 = vmatpush.bf16.msra.mxu3 %v3544_v58  ;;  %v3897_v58 = vld [vmem:[%s4443_s29 + $0x364] sm:$0xf] }
 0x11a   : > { %2278 = vmatpush.bf16.msrb.mxu2 %v3420_v3  ;;  %v3580_v2 = vor.u32 %v3897_v58, %v3577_v59  ;;  %v531_v58 = vperm.slane %v4782_v32, 3 }
 0x11b   : > { %2303 = vmatpush.bf16.msra.mxu0 %v3216_v12  ;;  %v1271_v56 = vpop.f32.mrf.mxu2  ;;  %v3528_v12 = vor.u32 %v3887_v9, %v3527_v8 }
 0x11c   : > { %v1272_v50 = vadd.f32 %v1271_v56, %v1258_v43  ;;  %v1285_v51 = vpop.f32.mrf.mxu3  ;;  %v3220_v43 = vor.u32 %v3806_v34, %v3217_v36  ;;  %v3901_v56 = vld [vmem:[%s4443_s29 + $0x384] sm:$0xf] }
 0x11d   : > { %2237 = vmatpush.bf16.msra.mxu3 %v3528_v12  ;;  %v3561_v12 = vld [vmem:[%s4443_s29 + $0x350] sm:$0xf0] }
 0x11e   : > { %v1286_v63 = vadd.f32 %v1285_v51, %v1272_v50  ;;  %2279 = vmatpush.bf16.msrb.mxu2 %v3404_v18  ;;  %v3564_v17 = vor.u32 %v3893_v11, %v3561_v12  ;;  %v3830_v11 = vld [vmem:[%s4443_s29 + $0x14c] sm:$0xf]  ;;  %v3313_v12 = vld [vmem:[%s4443_s29 + $0x158] sm:$0xf0] }
 0x11f   : > { %2304 = vmatpush.bf16.msra.mxu0 %v3200_v23  ;;  %v3644_v23 = vor.u32 %v3913_v19, %v3641_v20  ;;  %v3790_v20 = vld [vmem:[%s4443_s29 + $0xc] sm:$0xf] }
 0x120   : > { %v1405_v6 = vmax.f32 %v1286_v63, 0.0  ;;  %v3311_v63 = vld [vmem:[%s4443_s29 + $0x148] sm:$0xf] }
 0x121   : > { %2286 = vmatpush.bf16.msrb.mxu3 %v3644_v23  ;;  %v3312_v9 = vor.u32 %v3832_v0, %v3311_v63  ;;  %v3153_v23 = vld [vmem:[%s4443_s29 + $0x18] sm:$0xf0]  ;;  %v3872_v63 = vld [vmem:[%s4443_s29 + $0x294] sm:$0xf0] }
 0x122   : > { %v4878_v15 = vpack.c.bf16 %v1405_v6, %v1401_v62  ;;  %v3794_v6 = vld [vmem:[%s4443_s29 + $0x2c] sm:$0xf]  ;;  %v3156_v36 = vor.u32 %v3790_v20, %v3153_v23  ;;  %v3316_v20 = vor.u32 %v3830_v11, %v3313_v12  ;;  %v3297_v23 = vld [vmem:[%s4443_s29 + $0x138] sm:$0xf0] }
 0x123   : > { %2305 = vmatpush.bf16.msra.mxu0 %v3184_v38  ;;  %v3609_v38 = vld [vmem:[%s4443_s29 + $0x3b0] sm:$0xf0]  ;;  %v3862_v11 = vld [vmem:[%s4443_s29 + $0x24c] sm:$0xf]  ;;  %v3441_v12 = vld [vmem:[%s4443_s29 + $0x258] sm:$0xf0] }
 0x124   : > { %2210 = vmatmul.bf16.vlgmr.msra.gmra.mxu1 %v4878_v15  ;;  %v3612_v41 = vor.u32 %v3905_v37, %v3609_v38  ;;  %v3519_v37 = vld [vmem:[%s4443_s29 + $0x2e8] sm:$0xf]  ;;  %v3884_v38 = vld [vmem:[%s4443_s29 + $0x2f4] sm:$0xf0] }
 0x125   : > { %2314 = vmatpush.bf16.msra.mxu1 %v3392_v10  ;;  %2287 = vmatpush.bf16.msrb.mxu3 %v3628_v30  ;;  %v3169_v10 = vld [vmem:[%s4443_s29 + $0x38] sm:$0xf0]  ;;  %v3850_v30 = vld [vmem:[%s4443_s29 + $0x1ec] sm:$0xf]  ;;  %v3520_v44 = vor.u32 %v3884_v38, %v3519_v37  ;;  %v3407_v37 = vld [vmem:[%s4443_s29 + $0x208] sm:$0xf] }
 0x126   : > { %v3172_v19 = vor.u32 %v3794_v6, %v3169_v10  ;;  %v3856_v38 = vld [vmem:[%s4443_s29 + $0x214] sm:$0xf0] }
 0x127   : > { %2306 = vmatpush.bf16.msra.mxu0 %v3168_v61  ;;  %v3593_v61 = vld [vmem:[%s4443_s29 + $0x390] sm:$0xf0] }
 0x128   : > { %v3596_v50 = vor.u32 %v3901_v56, %v3593_v61  ;;  %v3880_v56 = vld [vmem:[%s4443_s29 + $0x2d4] sm:$0xf0] }
 0x129   : > { %2315 = vmatpush.bf16.msra.mxu1 %v3376_v24  ;;  %2288 = vmatpush.bf16.msrb.mxu3 %v3612_v41  ;;  %v3889_v24 = vld [vmem:[%s4443_s29 + $0x324] sm:$0xf]  ;;  %v3529_v41 = vld [vmem:[%s4443_s29 + $0x310] sm:$0xf0]  ;;  %v3504_v49 = vor.u32 %v3880_v56, %v3503_v1 }
 0x12a   : > { %v3532_v61 = vor.u32 %v3885_v40, %v3529_v41  ;;  %v3882_v40 = vld [vmem:[%s4443_s29 + $0x2ec] sm:$0xf]  ;;  %v3521_v41 = vld [vmem:[%s4443_s29 + $0x2f8] sm:$0xf0] }
 0x12b   : > { %2307 = vmatpush.bf16.msra.mxu0 %v3152_v4  ;;  %v1297_v42 = vpop.f32.mrf.mxu0 }
 0x12c   : > { %v1298_v45 = vadd.f32 %v1297_v42, %v530_v31  ;;  %v1311_v46 = vpop.f32.mrf.mxu1 }
 0x12d   : > { %2316 = vmatpush.bf16.msra.mxu1 %v3360_v35  ;;  %2289 = vmatpush.bf16.msrb.mxu3 %v3596_v50  ;;  %v3842_v50 = vld [vmem:[%s4443_s29 + $0x1ac] sm:$0xf] }
 0x12e   : > { %2308 = vmatmul.bf16.vlgmr.msra.gmra.mxu0 %v4822_v60  ;;  %v1312_v51 = vadd.f32 %v1311_v46, %v1298_v45  ;;  %v3846_v45 = vld [vmem:[%s4443_s29 + $0x1cc] sm:$0xf]  ;;  %v3377_v46 = vld [vmem:[%s4443_s29 + $0x1d8] sm:$0xf0] }
 0x12f   : > { %2356 = vmatpush.bf16.msrb.mxu0 %v3268_v7  ;;  %v3380_v48 = vor.u32 %v3846_v45, %v3377_v46  ;;  %v3916_v45 = vld [vmem:[%s4443_s29 + $0x3f4] sm:$0xf0]  ;;  %v3408_v46 = vor.u32 %v3856_v38, %v3407_v37  ;;  %v3906_v37 = vld [vmem:[%s4443_s29 + $0x3ac] sm:$0xf]  ;;  %v3617_v38 = vld [vmem:[%s4443_s29 + $0x3b8] sm:$0xf0] }
 0x131   : > { %2317 = vmatpush.bf16.msra.mxu1 %v3344_v47  ;;  %2290 = vmatpush.bf16.msrb.mxu3 %v3580_v2 }
 0x133   : > { %2357 = vmatpush.bf16.msrb.mxu0 %v3252_v21  ;;  %v1325_v54 = vpop.f32.mrf.mxu2  ;;  %v1299_v4 = vpop.f32.mrf.mxu0 }
 0x134   : > { %v1339_v62 = vpop.f32.mrf.mxu3  ;;  %v1326_v3 = vadd.f32 %v1325_v54, %v1312_v51  ;;  %2266 = vmatmul.bf16.vlgmr.msrb.gmra.mxu1 %v4878_v15  ;;  %v1300_v7 = vadd.f32 %v1299_v4, %v530_v31  ;;  %v1313_v8 = vpop.f32.mrf.mxu1  ;;  %v3393_v31 = vld [vmem:[%s4443_s29 + $0x1f8] sm:$0xf0]  ;;  %v3834_v4 = vld [vmem:[%s4443_s29 + $0x16c] sm:$0xf] }
 0x135   : > { %2318 = vmatpush.bf16.msra.mxu1 %v3328_v55  ;;  %2291 = vmatpush.bf16.msrb.mxu3 %v3564_v17  ;;  %v3361_v51 = vld [vmem:[%s4443_s29 + $0x1b8] sm:$0xf0]  ;;  %v3439_v17 = vld [vmem:[%s4443_s29 + $0x248] sm:$0xf] }
 0x136   : > { %v1314_v16 = vadd.f32 %v1313_v8, %v1300_v7  ;;  %v1340_v18 = vadd.f32 %v1339_v62, %v1326_v3  ;;  %v3364_v54 = vor.u32 %v3842_v50, %v3361_v51  ;;  %v3471_v62 = vld [vmem:[%s4443_s29 + $0x288] sm:$0xf]  ;;  %v3868_v8 = vld [vmem:[%s4443_s29 + $0x274] sm:$0xf0]  ;;  %v3505_v50 = vld [vmem:[%s4443_s29 + $0x2d8] sm:$0xf0] }
 0x137   : > { %2358 = vmatpush.bf16.msrb.mxu0 %v3236_v33  ;;  %v3548_v33 = vor.u32 %v3889_v24, %v3545_v25  ;;  %v3472_v3 = vor.u32 %v3872_v63, %v3471_v62  ;;  %v3455_v7 = vld [vmem:[%s4443_s29 + $0x268] sm:$0xf] }
 0x138   : > { %v1402_v34 = vmax.f32 %v1340_v18, 0.0  ;;  %v3456_v10 = vor.u32 %v3868_v8, %v3455_v7  ;;  %v3864_v18 = vld [vmem:[%s4443_s29 + $0x254] sm:$0xf0]  ;;  %v3423_v25 = vld [vmem:[%s4443_s29 + $0x228] sm:$0xf] }
 0x139   : > { %2319 = vmatpush.bf16.msra.mxu1 %v3312_v9  ;;  %2292 = vmatpush.bf16.msrb.mxu3 %v3548_v33  ;;  %v3822_v33 = vld [vmem:[%s4443_s29 + $0x10c] sm:$0xf]  ;;  %v3457_v7 = vld [vmem:[%s4443_s29 + $0x278] sm:$0xf0]  ;;  %v3583_v8 = vld [vmem:[%s4443_s29 + $0x368] sm:$0xf] }
 0x13b   : > { %2359 = vmatpush.bf16.msrb.mxu0 %v3220_v43  ;;  %v1327_v21 = vpop.f32.mrf.mxu2  ;;  %v3396_v43 = vor.u32 %v3850_v30, %v3393_v31 }
 0x13c   : > { %v1328_v26 = vadd.f32 %v1327_v21, %v1314_v16  ;;  %v1341_v27 = vpop.f32.mrf.mxu3  ;;  %v3440_v21 = vor.u32 %v3864_v18, %v3439_v17  ;;  %v3858_v18 = vld [vmem:[%s4443_s29 + $0x22c] sm:$0xf] }
 0x13d   : > { %2320 = vmatpush.bf16.msra.mxu1 %v3296_v22  ;;  %2293 = vmatpush.bf16.msrb.mxu3 %v3532_v61  ;;  %v3826_v22 = vld [vmem:[%s4443_s29 + $0x12c] sm:$0xf]  ;;  %v3524_v61 = vor.u32 %v3882_v40, %v3521_v41  ;;  %v3601_v41 = vld [vmem:[%s4443_s29 + $0x398] sm:$0xf0] }
 0x13e   : > { %v1342_v35 = vadd.f32 %v1341_v27, %v1328_v26  ;;  %v3860_v26 = vld [vmem:[%s4443_s29 + $0x234] sm:$0xf0]  ;;  %v3300_v29 = vor.u32 %v3826_v22, %v3297_v23  ;;  %v3902_v40 = vld [vmem:[%s4443_s29 + $0x38c] sm:$0xf] }
 0x13f   : > { %2360 = vmatpush.bf16.msrb.mxu0 %v3204_v52  ;;  %v3487_v52 = vld [vmem:[%s4443_s29 + $0x2a8] sm:$0xf]  ;;  %v3424_v31 = vor.u32 %v3860_v26, %v3423_v25  ;;  %v3409_v25 = vld [vmem:[%s4443_s29 + $0x218] sm:$0xf0] }
 0x140   : > { %v1406_v42 = vmax.f32 %v1342_v35, 0.0  ;;  %v3488_v55 = vor.u32 %v3876_v53, %v3487_v52  ;;  %v3631_v52 = vld [vmem:[%s4443_s29 + $0x3c8] sm:$0xf]  ;;  %v3912_v53 = vld [vmem:[%s4443_s29 + $0x3d4] sm:$0xf0] }
 0x141   : > { %2321 = vmatpush.bf16.msra.mxu1 %v3280_v39  ;;  %v3535_v26 = vld [vmem:[%s4443_s29 + $0x308] sm:$0xf] }
 0x142   : > { %v4932_v47 = vpack.c.bf16 %v1406_v42, %v1402_v34  ;;  %v3281_v34 = vld [vmem:[%s4443_s29 + $0x118] sm:$0xf0] }
 0x143   : > { %2361 = vmatpush.bf16.msrb.mxu0 %v3188_v5  ;;  %v3329_v5 = vld [vmem:[%s4443_s29 + $0x178] sm:$0xf0] }
 0x144   : > { %2224 = vmatmul.bf16.vlgmr.msra.gmra.mxu2 %v4932_v47  ;;  %2322 = vmatmul.bf16.vlgmr.msra.gmra.mxu1 %v4878_v15  ;;  %v3332_v9 = vor.u32 %v3834_v4, %v3329_v5 }
 0x145   : > { %2370 = vmatpush.bf16.msrb.mxu1 %v3396_v43  ;;  %2328 = vmatpush.bf16.msra.mxu2 %v3520_v44  ;;  %v3284_v43 = vor.u32 %v3822_v33, %v3281_v34  ;;  %v3647_v44 = vld [vmem:[%s4443_s29 + $0x3e8] sm:$0xf]  ;;  %v3910_v34 = vld [vmem:[%s4443_s29 + $0x3cc] sm:$0xf] }
 0x147   : > { %2362 = vmatpush.bf16.msrb.mxu0 %v3172_v19 }
 0x149   : > { %2371 = vmatpush.bf16.msrb.mxu1 %v3380_v48  ;;  %2329 = vmatpush.bf16.msra.mxu2 %v3504_v49  ;;  %v3648_v48 = vor.u32 %v3916_v45, %v3647_v44  ;;  %v3878_v49 = vld [vmem:[%s4443_s29 + $0x2cc] sm:$0xf]  ;;  %v3585_v44 = vld [vmem:[%s4443_s29 + $0x378] sm:$0xf0] }
 0x14b   : > { %2363 = vmatpush.bf16.msrb.mxu0 %v3156_v36  ;;  %v1353_v59 = vpop.f32.mrf.mxu0 }
 0x14c   : > { %v1367_v2 = vpop.f32.mrf.mxu1  ;;  %v1354_v6 = vadd.f32 %v1353_v59, %v531_v58  ;;  %v3908_v59 = vld [vmem:[%s4443_s29 + $0x3b4] sm:$0xf0] }
 0x14d   : > { %2372 = vmatpush.bf16.msrb.mxu1 %v3364_v54  ;;  %2330 = vmatpush.bf16.msra.mxu2 %v3488_v55  ;;  %v3508_v54 = vor.u32 %v3878_v49, %v3505_v50  ;;  %v3632_v55 = vor.u32 %v3912_v53, %v3631_v52  ;;  %v3886_v49 = vld [vmem:[%s4443_s29 + $0x30c] sm:$0xf]  ;;  %v3537_v50 = vld [vmem:[%s4443_s29 + $0x318] sm:$0xf0] }
 0x14e   : > { %2364 = vmatmul.bf16.vlgmr.msrb.gmra.mxu0 %v4822_v60  ;;  %v3345_v60 = vld [vmem:[%s4443_s29 + $0x198] sm:$0xf0]  ;;  %v1368_v13 = vadd.f32 %v1367_v2, %v1354_v6  ;;  %v3866_v6 = vld [vmem:[%s4443_s29 + $0x26c] sm:$0xf]  ;;  %v3540_v52 = vor.u32 %v3886_v49, %v3537_v50 }
 0x14f   : > { %v3348_v0 = vor.u32 %v3838_v57, %v3345_v60  ;;  %v3874_v57 = vld [vmem:[%s4443_s29 + $0x2ac] sm:$0xf]  ;;  %v3489_v60 = vld [vmem:[%s4443_s29 + $0x2b8] sm:$0xf0] }
 0x150   : > { %v3492_v62 = vor.u32 %v3874_v57, %v3489_v60  ;;  %v3473_v2 = vld [vmem:[%s4443_s29 + $0x298] sm:$0xf0] }
 0x151   : > { %2373 = vmatpush.bf16.msrb.mxu1 %v3348_v0  ;;  %2331 = vmatpush.bf16.msra.mxu2 %v3472_v3  ;;  %v3870_v0 = vld [vmem:[%s4443_s29 + $0x28c] sm:$0xf]  ;;  %v3904_v3 = vld [vmem:[%s4443_s29 + $0x394] sm:$0xf0] }
 0x152   : > { %v3476_v4 = vor.u32 %v3870_v0, %v3473_v2 }
 0x153   : > { %v1381_v32 = vpop.f32.mrf.mxu2  ;;  %v1355_v16 = vpop.f32.mrf.mxu0 }
 0x154   : > { %v1395_v14 = vpop.f32.mrf.mxu3  ;;  %v1356_v19 = vadd.f32 %v1355_v16, %v531_v58  ;;  %2280 = vmatmul.bf16.vlgmr.msrb.gmra.mxu2 %v4932_v47  ;;  %v1382_v24 = vadd.f32 %v1381_v32, %v1368_v13  ;;  %v1369_v27 = vpop.f32.mrf.mxu1  ;;  %v3615_v58 = vld [vmem:[%s4443_s29 + $0x3a8] sm:$0xf]  ;;  %v3460_v32 = vor.u32 %v3866_v6, %v3457_v7  ;;  %v3444_v16 = vor.u32 %v3862_v11, %v3441_v12 }
 0x155   : > { %2374 = vmatpush.bf16.msrb.mxu1 %v3332_v9  ;;  %2332 = vmatpush.bf16.msra.mxu2 %v3456_v10  ;;  %v3616_v63 = vor.u32 %v3908_v59, %v3615_v58  ;;  %v3900_v9 = vld [vmem:[%s4443_s29 + $0x374] sm:$0xf0]  ;;  %v3567_v13 = vld [vmem:[%s4443_s29 + $0x348] sm:$0xf] }
 0x156   : > { %v1370_v28 = vadd.f32 %v1369_v27, %v1356_v19  ;;  %v1396_v35 = vadd.f32 %v1395_v14, %v1382_v24  ;;  %v3584_v10 = vor.u32 %v3900_v9, %v3583_v8  ;;  %v3896_v14 = vld [vmem:[%s4443_s29 + $0x354] sm:$0xf0]  ;;  %v3425_v19 = vld [vmem:[%s4443_s29 + $0x238] sm:$0xf0]  ;;  %v3854_v24 = vld [vmem:[%s4443_s29 + $0x20c] sm:$0xf] }
 0x157   : > { %v3568_v17 = vor.u32 %v3896_v14, %v3567_v13  ;;  %v3428_v22 = vor.u32 %v3858_v18, %v3425_v19  ;;  %v3888_v27 = vld [vmem:[%s4443_s29 + $0x314] sm:$0xf0]  ;;  %v1412_v8 = vld [vmem:[#allocation2 + $0x8] sm:$0xff] }
 0x158   : > { %v1403_v1 = vmax.f32 %v1396_v35, 0.0  ;;  %v3633_v35 = vld [vmem:[%s4443_s29 + $0x3d8] sm:$0xf0] }
 0x159   : > { %2375 = vmatpush.bf16.msrb.mxu1 %v3316_v20  ;;  %2333 = vmatpush.bf16.msra.mxu2 %v3440_v21  ;;  %v3551_v20 = vld [vmem:[%s4443_s29 + $0x328] sm:$0xf]  ;;  %v3892_v21 = vld [vmem:[%s4443_s29 + $0x334] sm:$0xf0] }
 0x15a   : > { %v3552_v23 = vor.u32 %v3892_v21, %v3551_v20 }
 0x15b   : > { %v1383_v30 = vpop.f32.mrf.mxu2 }
 0x15c   : > { %v1384_v36 = vadd.f32 %v1383_v30, %v1370_v28  ;;  %v1397_v39 = vpop.f32.mrf.mxu3  ;;  %v3914_v28 = vld [vmem:[%s4443_s29 + $0x3ec] sm:$0xf]  ;;  %v3412_v30 = vor.u32 %v3854_v24, %v3409_v25 }
 0x15d   : > { %2376 = vmatpush.bf16.msrb.mxu1 %v3300_v29  ;;  %2334 = vmatpush.bf16.msra.mxu2 %v3424_v31  ;;  %v3649_v29 = vld [vmem:[%s4443_s29 + $0x3f8] sm:$0xf0]  ;;  %v3536_v31 = vor.u32 %v3888_v27, %v3535_v26 }
 0x15e   : > { %v1398_v42 = vadd.f32 %v1397_v39, %v1384_v36  ;;  %v3652_v33 = vor.u32 %v3914_v28, %v3649_v29  ;;  %v3636_v36 = vor.u32 %v3910_v34, %v3633_v35  ;;  %v3620_v39 = vor.u32 %v3906_v37, %v3617_v38 }
 0x160   : > { %v1407_v56 = vmax.f32 %v1398_v42, 0.0  ;;  %v3604_v42 = vor.u32 %v3902_v40, %v3601_v41  ;;  %v1414_v41 = vld [vmem:[#allocation2 + $0x28] sm:$0xff] }
 0x161   : > { %2377 = vmatpush.bf16.msrb.mxu1 %v3284_v43  ;;  %2335 = vmatpush.bf16.msra.mxu2 %v3408_v46  ;;  %v3898_v43 = vld [vmem:[%s4443_s29 + $0x36c] sm:$0xf] }
 0x162   : > { %v4971_v51 = vpack.c.bf16 %v1407_v56, %v1403_v1  ;;  %v3588_v45 = vor.u32 %v3898_v43, %v3585_v44  ;;  %v3894_v46 = vld [vmem:[%s4443_s29 + $0x34c] sm:$0xf] }
 0x163   : > { %v3890_v56 = vld [vmem:[%s4443_s29 + $0x32c] sm:$0xf] }
 0x164   : > { %2238 = vmatmul.bf16.vlgmr.msra.gmra.mxu3 %v4971_v51  ;;  %2378 = vmatmul.bf16.vlgmr.msrb.gmra.mxu1 %v4878_v15  ;;  %v3599_v15 = vld [vmem:[%s4443_s29 + $0x388] sm:$0xf] }
 0x165   : > { %2384 = vmatpush.bf16.msrb.mxu2 %v3524_v61  ;;  %2342 = vmatpush.bf16.msra.mxu3 %v3648_v48  ;;  %v3600_v5 = vor.u32 %v3904_v3, %v3599_v15  ;;  %v3553_v61 = vld [vmem:[%s4443_s29 + $0x338] sm:$0xf0] }
 0x166   : > { %2336 = vmatmul.bf16.vlgmr.msra.gmra.mxu2 %v4932_v47  ;;  %v3556_v48 = vor.u32 %v3890_v56, %v3553_v61  ;;  %v1411_v61 = vld [vmem:[#allocation2 + $0x10] sm:$0xff] }
 0x169   : > { %2385 = vmatpush.bf16.msrb.mxu2 %v3508_v54  ;;  %2343 = vmatpush.bf16.msra.mxu3 %v3632_v55 }
 0x16d   : > { %2386 = vmatpush.bf16.msrb.mxu2 %v3492_v62  ;;  %2344 = vmatpush.bf16.msra.mxu3 %v3616_v63  ;;  %v1408_v63 = vld [vmem:[#allocation2 + $0x30] sm:$0xff] }
 0x171   : > { %2387 = vmatpush.bf16.msrb.mxu2 %v3476_v4  ;;  %2345 = vmatpush.bf16.msra.mxu3 %v3600_v5 }
 0x174   : > { %2294 = vmatmul.bf16.vlgmr.msrb.gmra.mxu3 %v4971_v51 }
 0x175   : > { %2388 = vmatpush.bf16.msrb.mxu2 %v3460_v32  ;;  %2346 = vmatpush.bf16.msra.mxu3 %v3584_v10 }
 0x179   : > { %2389 = vmatpush.bf16.msrb.mxu2 %v3444_v16  ;;  %2347 = vmatpush.bf16.msra.mxu3 %v3568_v17  ;;  %v1409_v16 = vld [vmem:[#allocation2] sm:$0xff] }
 0x17d   : > { %2390 = vmatpush.bf16.msrb.mxu2 %v3428_v22  ;;  %2348 = vmatpush.bf16.msra.mxu3 %v3552_v23  ;;  %v1413_v23 = vld [vmem:[#allocation2 + $0x20] sm:$0xff] }
 0x181   : > { %2391 = vmatpush.bf16.msrb.mxu2 %v3412_v30  ;;  %2349 = vmatpush.bf16.msra.mxu3 %v3536_v31  ;;  %v1410_v31 = vld [vmem:[#allocation2 + $0x18] sm:$0xff] }
 0x182   : > { %v2197_v54 = vpop.f32.mrf.mxu0 }
 0x184   : > { %2392 = vmatmul.bf16.vlgmr.msrb.gmra.mxu2 %v4932_v47  ;;  %2350 = vmatmul.bf16.vlgmr.msra.gmra.mxu3 %v4971_v51  ;;  %v3569_v47 = vld [vmem:[%s4443_s29 + $0x358] sm:$0xf0] }
 0x185   : > { %2398 = vmatpush.bf16.msrb.mxu3 %v3652_v33  ;;  %v3572_v1 = vor.u32 %v3894_v46, %v3569_v47 }
 0x189   : > { %2399 = vmatpush.bf16.msrb.mxu3 %v3636_v36 }
 0x18a   : > { %v2199_v60 = vpop.f32.mrf.mxu0 }
 0x18d   : > { %2400 = vmatpush.bf16.msrb.mxu3 %v3620_v39 }
 0x191   : > { %2401 = vmatpush.bf16.msrb.mxu3 %v3604_v42 }
 0x192   : > { %v2253_v4 = vpop.f32.mrf.mxu0 }
 0x195   : > { %2402 = vmatpush.bf16.msrb.mxu3 %v3588_v45 }
 0x199   : > { %2403 = vmatpush.bf16.msrb.mxu3 %v3572_v1 }
 0x19a   : > { %v2255_v12 = vpop.f32.mrf.mxu0 }
 0x19d   : > { %2404 = vmatpush.bf16.msrb.mxu3 %v3556_v48 }
 0x1a1   : > { %2405 = vmatpush.bf16.msrb.mxu3 %v3540_v52  ;;  %v2211_v53 = vpop.f32.mrf.mxu1 }
 0x1a2   : > { %v2212_v59 = vadd.f32 %v2211_v53, %v2197_v54 }
 0x1a4   : > { %2406 = vmatmul.bf16.vlgmr.msrb.gmra.mxu3 %v4971_v51 }
 0x1a9   : > { %v2213_v57 = vpop.f32.mrf.mxu1 }
 0x1aa   : > { %v2214_v5 = vadd.f32 %v2213_v57, %v2199_v60  ;;  %v1415_v60 = vld [vmem:[#allocation2 + $0x38] sm:$0xff] }
 0x1ab   : > { %v2309_v26 = vpop.f32.mrf.mxu0 }
 0x1b1   : > { %v2267_v3 = vpop.f32.mrf.mxu1 }
 0x1b2   : > { %v2268_v10 = vadd.f32 %v2267_v3, %v2253_v4 }
 0x1b3   : > { %v2311_v37 = vpop.f32.mrf.mxu0 }
 0x1b9   : > { %v2269_v11 = vpop.f32.mrf.mxu1 }
 0x1ba   : > { %v2270_v20 = vadd.f32 %v2269_v11, %v2255_v12 }
 0x1c1   : > { %v2323_v22 = vpop.f32.mrf.mxu1 }
 0x1c2   : > { %v2324_v29 = vadd.f32 %v2323_v22, %v2309_v26 }
 0x1c7   : > { %v2225_v55 = vpop.f32.mrf.mxu2 }
 0x1c8   : > { %v2226_v62 = vadd.f32 %v2225_v55, %v2212_v59 }
 0x1c9   : > { %v2325_v35 = vpop.f32.mrf.mxu1 }
 0x1ca   : > { %v2326_v39 = vadd.f32 %v2325_v35, %v2311_v37 }
 0x1cb   : > { %v2365_v46 = vpop.f32.mrf.mxu0 }
 0x1cf   : > { %v2227_v58 = vpop.f32.mrf.mxu2 }
 0x1d0   : > { %v2228_v7 = vadd.f32 %v2227_v58, %v2214_v5 }
 0x1d3   : > { %v2367_v53 = vpop.f32.mrf.mxu0 }
 0x1d7   : > { %v2281_v6 = vpop.f32.mrf.mxu2 }
 0x1d8   : > { %v2282_v13 = vadd.f32 %v2281_v6, %v2268_v10 }
 0x1df   : > { %v2283_v14 = vpop.f32.mrf.mxu2 }
 0x1e0   : > { %v2284_v21 = vadd.f32 %v2283_v14, %v2270_v20 }
 0x1e1   : > { %v2379_v45 = vpop.f32.mrf.mxu1 }
 0x1e2   : > { %v2380_v1 = vadd.f32 %v2379_v45, %v2365_v46 }
 0x1e7   : > { %v2239_v0 = vpop.f32.mrf.mxu3 }
 0x1e8   : > { %v2240_v2 = vadd.f32 %v2239_v0, %v2226_v62 }
 0x1e9   : > { %v2337_v27 = vpop.f32.mrf.mxu2  ;;  %v2381_v50 = vpop.f32.mrf.mxu1 }
 0x1ea   : > { %v2412_v15 = vadd.f32 %v2240_v2, %v1408_v63  ;;  %v2338_v30 = vadd.f32 %v2337_v27, %v2324_v29  ;;  %v2382_v55 = vadd.f32 %v2381_v50, %v2367_v53 }
 0x1ec   : > { %2420 = vst [vmem:[#allocation2 + $0x30] sm:$0xff] %v2412_v15 }
 0x1ef   : > { %v2241_v51 = vpop.f32.mrf.mxu3 }
 0x1f0   : > { %v2242_v9 = vadd.f32 %v2241_v51, %v2228_v7 }
 0x1f1   : > { %v2339_v38 = vpop.f32.mrf.mxu2 }
 0x1f2   : > { %v2416_v32 = vadd.f32 %v2242_v9, %v1412_v8  ;;  %v2340_v40 = vadd.f32 %v2339_v38, %v2326_v39 }
 0x1f4   : > { %2424 = vst [vmem:[#allocation2 + $0x8] sm:$0xff] %v2416_v32 }
 0x1f7   : > { %v2295_v17 = vpop.f32.mrf.mxu3 }
 0x1f8   : > { %v2296_v18 = vadd.f32 %v2295_v17, %v2282_v13 }
 0x1fa   : > { %v2413_v19 = vadd.f32 %v2296_v18, %v1409_v16 }
 0x1fc   : > { %2421 = vst [vmem:[#allocation2] sm:$0xff] %v2413_v19 }
 0x1ff   : > { %v2297_v24 = vpop.f32.mrf.mxu3 }
 0x200   : > { %v2298_v25 = vadd.f32 %v2297_v24, %v2284_v21 }
 0x202   : > { %v2417_v28 = vadd.f32 %v2298_v25, %v1413_v23 }
 0x204   : > { %2425 = vst [vmem:[#allocation2 + $0x20] sm:$0xff] %v2417_v28 }
 0x207   : > { %v2351_v33 = vpop.f32.mrf.mxu3  ;;  %v2393_v47 = vpop.f32.mrf.mxu2 }
 0x208   : > { %v2352_v34 = vadd.f32 %v2351_v33, %v2338_v30  ;;  %v2394_v56 = vadd.f32 %v2393_v47, %v2380_v1 }
 0x20a   : > { %v2414_v36 = vadd.f32 %v2352_v34, %v1410_v31 }
 0x20c   : > { %2422 = vst [vmem:[#allocation2 + $0x18] sm:$0xff] %v2414_v36 }
 0x20f   : > { %v2353_v42 = vpop.f32.mrf.mxu3  ;;  %v2395_v54 = vpop.f32.mrf.mxu2 }
 0x210   : > { %v2354_v43 = vadd.f32 %v2353_v42, %v2340_v40  ;;  %v2396_v57 = vadd.f32 %v2395_v54, %v2382_v55 }
 0x212   : > { %v2418_v44 = vadd.f32 %v2354_v43, %v1414_v41 }
 0x214   : > { %2426 = vst [vmem:[#allocation2 + $0x28] sm:$0xff] %v2418_v44 }
 0x227   : > { %v2407_v48 = vpop.f32.mrf.mxu3 }
 0x228   : > { %v2408_v49 = vadd.f32 %v2407_v48, %v2394_v56 }
 0x22a   : > { %v2415_v52 = vadd.f32 %v2408_v49, %v1411_v61 }
 0x22c   : > { %2423 = vst [vmem:[#allocation2 + $0x10] sm:$0xff] %v2415_v52 }
 0x22f   : > { %v2409_v58 = vpop.f32.mrf.mxu3 }
 0x230   : > { %v2410_v59 = vadd.f32 %v2409_v58, %v2396_v57  ;;  %2431 = sbr.rel (%p3653_p2) target bundleno = 578 (0x242), region = 68 }
 0x232   : > { %v2419_v62 = vadd.f32 %v2410_v59, %v1415_v60 }
 0x234   : > { %2427 = vst [vmem:[#allocation2 + $0x38] sm:$0xff] %v2419_v62 }
 0x235   : > { %v2432_v63 = vld [vmem:[#allocation2 + $0x30] sm:$0xff]  ;;  %v2440_v0 = vld [vmem:[#allocation11] sm:$0xf]  ;;  %v2433_v2 = vld [vmem:[#allocation2] sm:$0xff] }
 0x236   : > { %v2442_v15 = vperm.slane %v2440_v0, 0  ;;  %v2443_v3 = vperm.slane %v2440_v0, 1  ;;  %v2434_v4 = vld [vmem:[#allocation2 + $0x18] sm:$0xff]  ;;  %v2444_v5 = vperm.slane %v2440_v0, 2  ;;  %v2435_v6 = vld [vmem:[#allocation2 + $0x10] sm:$0xff]  ;;  %v2445_v7 = vperm.slane %v2440_v0, 3 }
 0x237   : > { %v2436_v8 = vld [vmem:[#allocation2 + $0x8] sm:$0xff]  ;;  %v2437_v10 = vld [vmem:[#allocation2 + $0x20] sm:$0xff] }
 0x238   : > { %v2450_v51 = vadd.f32 %v2442_v15, %v2432_v63  ;;  %v2451_v9 = vadd.f32 %v2443_v3, %v2433_v2  ;;  %v2452_v32 = vadd.f32 %v2444_v5, %v2434_v4  ;;  %v2453_v11 = vadd.f32 %v2445_v7, %v2435_v6  ;;  %v2438_v12 = vld [vmem:[#allocation2 + $0x28] sm:$0xff] }
 0x239   : > { %v2454_v13 = vadd.f32 %v2442_v15, %v2436_v8  ;;  %v2455_v16 = vadd.f32 %v2443_v3, %v2437_v10  ;;  %v2456_v17 = vadd.f32 %v2444_v5, %v2438_v12 }
 0x23a   : > { %2458 = vst [vmem:[#allocation12] sm:$0xff] %v2450_v51 }
 0x23b   : > { %v2439_v14 = vld [vmem:[#allocation2 + $0x38] sm:$0xff]  ;;  %2459 = vst [vmem:[#allocation12 + $0x8] sm:$0xff] %v2451_v9 }
 0x23c   : > { %2460 = vst [vmem:[#allocation12 + $0x10] sm:$0xff] %v2452_v32  ;;  %v2457_v18 = vadd.f32 %v2445_v7, %v2439_v14 }
 0x23d   : > { %2461 = vst [vmem:[#allocation12 + $0x18] sm:$0xff] %v2453_v11 }
 0x23e   : > { %2462 = vst [vmem:[#allocation12 + $0x20] sm:$0xff] %v2454_v13 }
 0x23f   : > { %2463 = vst [vmem:[#allocation12 + $0x28] sm:$0xff] %v2455_v16 }
 0x240   : > { %2464 = vst [vmem:[#allocation12 + $0x30] sm:$0xff] %v2456_v17 }
 0x241   : > { %2465 = vst [vmem:[#allocation12 + $0x38] sm:$0xff] %v2457_v18 }
 0x242 PF: > { %p3957_p3 = scmp.eq.s32.totalorder %s4334_s24, 3  ;;  %s2477_s7 = sshll.u32 %s5050_s5, 4  ;;  %s2478_s7 = int_to_ptr.hbm [resolvable:$true] %s2477_s7 }
 0x243   : > { %s4272_s16 = smov [#allocation12]   ;;  %s4273_s25 = smov 512  }
 0x244   : > { %s2475_s17 = sshll.u32 %s4272_s16, 4  ;;  %s4274_s13 = smov 32   ;;  %s2476_s17 = int_to_ptr.vmem [resolvable:$true] %s2475_s17 }
 0x245   : > { %3932 = dma.vmem_to_hbm [thread:$0]  (%p3957_p3), %s2476_s17, 1024, %s2478_s7, [#allocation5], %s4273_s25, %s4273_s25, %s4274_s13  }
 0x246   : > { %4237 = dma.done.wait (%p3957_p3), [#allocation5], 1024  }
 0x247   : > { %4239 = vsyncadd (%p3957_p3), [#allocation5], 4294966272 }
 0x248 PF: > { %s23_s23 = sadd.s32 1, %s4262_s23   ;;  %s5069_s9 = sld [smem:[#allocation18_spill]] }
 0x249   : > { %p20_p4 = scmp.ge.s32.totalorder %s23_s23, 6   ;;  %s5070_s20 = sld [smem:[#allocation20_spill]] }
 0x24a   : > { %s5071_s24 = sld [smem:[#allocation19_spill]]  ;;  %s5072_s18 = smov %s4246_s19 }
 0x24b   : > { %s5074_s21 = smov %s4258_s22 }
 0x24c   :  { %22 = sbr.rel (!%p20_p4) target bundleno = 11 (0xb), region = 120 }
 0x24e   : > { %s5073_s19 = smov %s5069_s9 }
 0x250   : > { %s5075_s22 = smov %s5071_s24 }
 0x251   :  { %2494 = vsyncpa [#allocation4], 1 }
 0x252   :  { %2496 = vsyncpa [#allocation4 + $0x1], 1 }
 0x253   :  { %2497 = vsyncpa [#allocation7], 1 }
 0x254   :  { %2499 = vsyncpa [#allocation7 + $0x1], 1 }
 0x255   :  { %2500 = vsyncpa [#allocation10], 1 }
 0x256   :  { %2502 = vsyncpa [#allocation10 + $0x1], 1 }
 0x257   :  { %2503 = vsyncpa [#allocation5], 1 }
 0x258   :  { %2505 = vsyncpa [#allocation5 + $0x1], 1 }

</bundles_post_ra>
